<compile_context>
chip_gen: v7x
topology: tpu7x:2x2x1
jax: 0.10.0
libtpu: 0.0.40
codegen_flags: <defaults>
</compile_context>

<pallas_src>
import functools

import jax
import jax.numpy as jnp
from jax.experimental import pallas as pl
from jax.experimental.pallas import tpu as pltpu

EPS = 1e-5            # PyTorch BatchNorm2d default eps
LANE = 128
VMEM_BUDGET = 24 * 1024 * 1024   # headroom within v7x 64 MiB phys / 32 MiB scoped
VMEM_LIMIT = 32 * 1024 * 1024


def _round_up(x, m):
    return ((x + m - 1) // m) * m


def _pick_tile_m(M, k, n, weight_bytes, inter_cols=0, in_bytes=2, out_bytes=4):
    """Largest M-tile whose double-buffered working set fits the VMEM budget."""
    if M < 128:
        return _round_up(max(M, 16), 16)          # single full-M tile
    for t in (2048, 1024, 512, 256, 128):
        if t <= M:
            need = (2 * t * k * in_bytes           # input tile, double-buffered
                    + weight_bytes                 # weights (conservatively 2x)
                    + 2 * t * n * out_bytes        # output tile, double-buffered
                    + t * inter_cols * 4)          # in-kernel f32 intermediate
            if need <= VMEM_BUDGET:
                return t
    return 128


# -----------------------------------------------------------------------------
# Kernel 1: fused 1x1 conv (BN scale pre-folded into weights) + shift + ReLU
# -----------------------------------------------------------------------------
def _conv1x1_bn_relu_kernel(x_ref, w_ref, shift_ref, o_ref):
    acc = jnp.dot(x_ref[...], w_ref[...], preferred_element_type=jnp.float32)
    o_ref[...] = jnp.maximum(acc + shift_ref[...], 0.0).astype(o_ref.dtype)


def conv1x1_bn_relu(x2d, w, shift, out_dtype):
    M, K = x2d.shape
    C = w.shape[1]
    tile_m = _pick_tile_m(M, K, C, weight_bytes=2 * K * C * 2)
    Mp = _round_up(M, tile_m)
    if Mp != M:
        x2d = jnp.pad(x2d, ((0, Mp - M), (0, 0)))
    out = pl.pallas_call(
        _conv1x1_bn_relu_kernel,
        out_shape=jax.ShapeDtypeStruct((Mp, C), out_dtype),
        grid=(Mp // tile_m,),
        in_specs=[
            pl.BlockSpec((tile_m, K), lambda i: (i, 0)),
            pl.BlockSpec((K, C), lambda i: (0, 0)),
            pl.BlockSpec((1, C), lambda i: (0, 0)),
        ],
        out_specs=pl.BlockSpec((tile_m, C), lambda i: (i, 0)),
        compiler_params=pltpu.CompilerParams(
            dimension_semantics=("parallel",),
            vmem_limit_bytes=VMEM_LIMIT),
    )(x2d, w, shift)
    return out[:M] if Mp != M else out


# -----------------------------------------------------------------------------
# Kernel 2: fused [sub-pixel stride-2 deconv (all 4 phases as one GEMM)]
#           -> [1x1 conv with BN folded] -> shift -> ReLU
# -----------------------------------------------------------------------------
def _deconv_conv1x1_bn_relu_kernel(p_ref, wd_ref, w2_ref, shift_ref, o_ref):
    h = jnp.dot(p_ref[...], wd_ref[...], preferred_element_type=jnp.float32)
    y = jnp.dot(h.astype(jnp.bfloat16), w2_ref[...],
                preferred_element_type=jnp.float32)
    o_ref[...] = jnp.maximum(y + shift_ref[...], 0.0).astype(o_ref.dtype)


def deconv_conv1x1_bn_relu(p2d, wd, w2, shift, out_dtype):
    M, K = p2d.shape
    Kh = wd.shape[1]
    C = w2.shape[1]
    wbytes = 2 * (K * Kh + Kh * C) * 2
    tile_m = _pick_tile_m(M, K, C, wbytes, inter_cols=Kh)
    Mp = _round_up(M, tile_m)
    if Mp != M:
        p2d = jnp.pad(p2d, ((0, Mp - M), (0, 0)))
    out = pl.pallas_call(
        _deconv_conv1x1_bn_relu_kernel,
        out_shape=jax.ShapeDtypeStruct((Mp, C), out_dtype),
        grid=(Mp // tile_m,),
        in_specs=[
            pl.BlockSpec((tile_m, K), lambda i: (i, 0)),
            pl.BlockSpec((K, Kh), lambda i: (0, 0)),
            pl.BlockSpec((Kh, C), lambda i: (0, 0)),
            pl.BlockSpec((1, C), lambda i: (0, 0)),
        ],
        out_specs=pl.BlockSpec((tile_m, C), lambda i: (i, 0)),
        compiler_params=pltpu.CompilerParams(
            dimension_semantics=("parallel",),
            vmem_limit_bytes=VMEM_LIMIT),
    )(p2d, wd, w2, shift)
    return out[:M] if Mp != M else out


# -----------------------------------------------------------------------------
# Parameters (deterministic, shapes from the module __init__)
# -----------------------------------------------------------------------------
def init_decoder_params(key, in_map, out_map):
    c_mid = in_map // 4
    ks = jax.random.split(key, 12)
    p = {}
    p["w1"] = 0.2 * jax.random.normal(ks[0], (c_mid, in_map, 1, 1), jnp.float32)
    p["b1"] = 0.1 * jax.random.normal(ks[1], (c_mid,), jnp.float32)
    p["bn1_gamma"] = 1.0 + 0.1 * jax.random.normal(ks[2], (c_mid,), jnp.float32)
    p["bn1_beta"] = 0.1 * jax.random.normal(ks[3], (c_mid,), jnp.float32)
    p["bn1_mean"] = 0.1 * jax.random.normal(ks[4], (c_mid,), jnp.float32)
    p["bn1_var"] = 0.5 + jnp.abs(jax.random.normal(ks[5], (c_mid,), jnp.float32))
    p["wt"] = 0.2 * jax.random.normal(ks[6], (c_mid, c_mid, 3, 3), jnp.float32)
    p["bt"] = 0.1 * jax.random.normal(ks[7], (c_mid,), jnp.float32)
    p["w2"] = 0.2 * jax.random.normal(ks[8], (out_map, c_mid, 1, 1), jnp.float32)
    p["b2"] = 0.1 * jax.random.normal(ks[9], (out_map,), jnp.float32)
    p["bn2_gamma"] = 1.0 + 0.1 * jax.random.normal(ks[10], (out_map,), jnp.float32)
    p["bn2_beta"] = 0.1 * jax.random.normal(ks[11], (out_map,), jnp.float32)
    p["bn2_mean"] = jnp.zeros((out_map,), jnp.float32)
    p["bn2_var"] = jnp.ones((out_map,), jnp.float32)
    return p


# -----------------------------------------------------------------------------
# decoder.forward(x, output_size)
# -----------------------------------------------------------------------------
def decoder_forward(x_nchw, params, output_size):
    N, c_in, H, W = x_nchw.shape
    OH, OW = int(output_size[-2]), int(output_size[-1])
    c_mid = c_in // 4
    c_out = params["w2"].shape[0]

    # lane-dense padded channel widths (padded channels are exactly zero)
    c_mid_p = _round_up(c_mid, LANE)        # stage-1 output / deconv channels
    c_out_p = _round_up(c_out, LANE // 4)   # 4 phases * c_out_p = multiple of 128

    op_h = OH - ((H - 1) * 2 - 2 + 3)
    op_w = OW - ((W - 1) * 2 - 2 + 3)
    assert 0 <= op_h < 2 and 0 <= op_w < 2, "output_size invalid for stride-2 deconv"

    # --- stage 1: 1x1 conv + BN(eval) + ReLU (BN scale folded into the weight)
    s1 = params["bn1_gamma"] / jnp.sqrt(params["bn1_var"] + EPS)
    t1 = (params["b1"] - params["bn1_mean"]) * s1 + params["bn1_beta"]
    w1 = jnp.transpose(params["w1"][:, :, 0, 0], (1, 0)) * s1[None, :]   # (c_in, c_mid)
    w1p = jnp.pad(w1, ((0, 0), (0, c_mid_p - c_mid))).astype(jnp.bfloat16)
    t1p = jnp.pad(t1, (0, c_mid_p - c_mid)).reshape(1, c_mid_p).astype(jnp.float32)

    x = jnp.transpose(x_nchw, (0, 2, 3, 1)).reshape(N * H * W, c_in).astype(jnp.bfloat16)
    h1 = conv1x1_bn_relu(x, w1p, t1p, jnp.bfloat16)          # (N*H*W, c_mid_p)
    h1 = h1.reshape(N, H, W, c_mid_p)

    # --- stage 2+3 fused: sub-pixel decomposition of ConvTranspose2d(3, s=2, p=1)
    # Output y[2m+dh, 2n+dw] needs only taps x[m,n], x[m,n+1], x[m+1,n], x[m+1,n+1]
    # with weights Wt[:, :, kh, kw] selected per phase (structural zeros elsewhere).
    xpad = jnp.pad(h1, ((0, 0), (0, 1), (0, 1), (0, 0)))
    taps = [xpad[:, :H, :W, :], xpad[:, :H, 1:, :],
            xpad[:, 1:, :W, :], xpad[:, 1:, 1:, :]]
    P = jnp.concatenate(taps, axis=-1).reshape(N * H * W, 4 * c_mid_p)

    Wt = params["wt"]                                        # (c_in, c_out, kh, kw)

    def tap_w(kh, kw):
        return jnp.pad(Wt[:, :, kh, kw],
                       ((0, c_mid_p - c_mid), (0, c_mid_p - c_mid)))

    # phase 0=(even,even) 1=(even,odd) 2=(odd,even) 3=(odd,odd); tap order matches P
    Wd = jnp.zeros((4, c_mid_p, 4, c_mid_p), jnp.float32)
    Wd = Wd.at[0, :, 0, :].set(tap_w(1, 1))
    Wd = Wd.at[0, :, 1, :].set(tap_w(1, 2))
    Wd = Wd.at[1, :, 1, :].set(tap_w(1, 0))
    Wd = Wd.at[0, :, 2, :].set(tap_w(2, 1))
    Wd = Wd.at[2, :, 2, :].set(tap_w(0, 1))
    Wd = Wd.at[0, :, 3, :].set(tap_w(2, 2))
    Wd = Wd.at[1, :, 3, :].set(tap_w(2, 0))
    Wd = Wd.at[2, :, 3, :].set(tap_w(0, 2))
    Wd = Wd.at[3, :, 3, :].set(tap_w(0, 0))
    Wd = Wd.reshape(4 * c_mid_p, 4 * c_mid_p).astype(jnp.bfloat16)

    # stage-3 1x1 conv with BN folded; block-diagonal over the 4 phases
    s2 = params["bn2_gamma"] / jnp.sqrt(params["bn2_var"] + EPS)
    t2 = (params["b2"] - params["bn2_mean"]) * s2 + params["bn2_beta"]
    w2 = jnp.transpose(params["w2"][:, :, 0, 0], (1, 0)) * s2[None, :]   # (c_mid, c_out)
    w2p = jnp.pad(w2, ((0, c_mid_p - c_mid), (0, c_out_p - c_out)))
    W2blk = jnp.zeros((4, c_mid_p, 4, c_out_p), jnp.float32)
    for ph in range(4):
        W2blk = W2blk.at[ph, :, ph, :].set(w2p)
    W2blk = W2blk.reshape(4 * c_mid_p, 4 * c_out_p).astype(jnp.bfloat16)

    # fold the deconv bias through the (linear) stage-3 conv into the final shift
    shift = t2 + params["bt"] @ w2                           # (c_out,)
    shiftp = jnp.tile(jnp.pad(shift, (0, c_out_p - c_out)), 4)
    shiftp = shiftp.reshape(1, 4 * c_out_p).astype(jnp.float32)

    y = deconv_conv1x1_bn_relu(P, Wd, W2blk, shiftp, jnp.float32)   # (N*H*W, 4*c_out_p)

    # scatter the 4 phases back to (N, OH, OW, c_out) and return NCHW
    y = y.reshape(N, H, W, 2, 2, c_out_p)
    y = jnp.transpose(y, (0, 1, 3, 2, 4, 5)).reshape(N, 2 * H, 2 * W, c_out_p)
    y = y[:, :OH, :OW, :c_out]
    return jnp.transpose(y, (0, 3, 1, 2))


if __name__ == "__main__":
    key = jax.random.PRNGKey(0)
    k_x, k_p = jax.random.split(key)

    N, in_map, out_map, H, W = 2, 16, 8, 8, 8
    x = jax.random.normal(k_x, (N, in_map, H, W), jnp.float32)
    params = init_decoder_params(k_p, in_map, out_map)
    output_size = (N, in_map // 4, 2 * H, 2 * W)   # as passed to deconv(output_size=...)

    fwd = jax.jit(functools.partial(decoder_forward, output_size=output_size))
    out = jax.block_until_ready(fwd(x, params))
    assert out.shape == (N, out_map, 2 * H, 2 * W), out.shape
    assert bool(jnp.all(out >= 0.0))   # final ReLU
    print("KERNEL_OK")
</pallas_src>

<mosaic_0001>
module attributes {stable_mosaic.version = 11 : i64} {
  func.func @_conv1x1_bn_relu_kernel(%arg0: i32, %arg1: memref<128x16xbf16, #tpu.memory_space<vmem>>, %arg2: memref<16x128xbf16, #tpu.memory_space<vmem>>, %arg3: memref<1x128xf32, #tpu.memory_space<vmem>>, %arg4: memref<128x128xbf16, #tpu.memory_space<vmem>>) attributes {dimension_semantics = [#tpu.dimension_semantics<parallel>], iteration_bounds = array<i64: 1>, scalar_prefetch = 0 : i64, scratch_operands = 0 : i64, tpu.core_type = #tpu.core_type<tc>, window_params = [{transform_indices = @transform_0, window_bounds = array<i64: 128, 16>}, {pipeline_mode = #tpu.pipeline_mode<synchronous>, transform_indices = @transform_1, window_bounds = array<i64: 16, 128>}, {pipeline_mode = #tpu.pipeline_mode<synchronous>, transform_indices = @transform_2, window_bounds = array<i64: 1, 128>}, {transform_indices = @transform_3, window_bounds = array<i64: 128, 128>}]} {
    %c0 = arith.constant 0 : index
    %c0_0 = arith.constant 0 : index
    %0 = vector.load %arg1[%c0, %c0_0] : memref<128x16xbf16, #tpu.memory_space<vmem>>, vector<128x16xbf16>
    %c0_1 = arith.constant 0 : index
    %c0_2 = arith.constant 0 : index
    %1 = vector.load %arg2[%c0_1, %c0_2] : memref<16x128xbf16, #tpu.memory_space<vmem>>, vector<16x128xbf16>
    %cst = arith.constant dense<0.000000e+00> : vector<128x128xf32>
    %2 = tpu.matmul %0, %1, %cst {dimension_numbers = #tpu.dot_dimension_numbers<[1], [0], [0], [1], [0, 0, 1, 1], [], []>} : vector<128x16xbf16>, vector<16x128xbf16>, vector<128x128xf32> -> vector<128x128xf32>
    %c0_3 = arith.constant 0 : index
    %c0_4 = arith.constant 0 : index
    %3 = vector.load %arg3[%c0_3, %c0_4] : memref<1x128xf32, #tpu.memory_space<vmem>>, vector<1x128xf32>
    %4 = vector.broadcast %3 : vector<1x128xf32> to vector<128x128xf32>
    %5 = arith.addf %2, %4 : vector<128x128xf32>
    %cst_5 = arith.constant 0.000000e+00 : f32
    %6 = vector.broadcast %cst_5 : f32 to vector<128x128xf32>
    %7 = arith.maximumf %5, %6 : vector<128x128xf32>
    %8 = arith.truncf %7 : vector<128x128xf32> to vector<128x128xbf16>
    %c0_6 = arith.constant 0 : index
    %c0_7 = arith.constant 0 : index
    %9 = vector.load %arg4[%c0_6, %c0_7] : memref<128x128xbf16, #tpu.memory_space<vmem>>, vector<128x128xbf16>
    tpu.vector_store %arg4[%c0_6, %c0_7], %8 {strides = array<i32>} : memref<128x128xbf16, #tpu.memory_space<vmem>>, vector<128x128xbf16>,
    return
  }
  func.func @transform_0(%arg0: i32) -> (i32, i32) {
    %c0_i32 = arith.constant 0 : i32
    %c0_i32_0 = arith.constant 0 : i32
    return %arg0, %c0_i32 : i32, i32
  }
  func.func @transform_1(%arg0: i32) -> (i32, i32) {
    %c0_i32 = arith.constant 0 : i32
    %c0_i32_0 = arith.constant 0 : i32
    %c0_i32_1 = arith.constant 0 : i32
    return %c0_i32, %c0_i32_0 : i32, i32
  }
  func.func @transform_2(%arg0: i32) -> (i32, i32) {
    %c0_i32 = arith.constant 0 : i32
    %c0_i32_0 = arith.constant 0 : i32
    %c0_i32_1 = arith.constant 0 : i32
    return %c0_i32, %c0_i32_0 : i32, i32
  }
  func.func @transform_3(%arg0: i32) -> (i32, i32) {
    %c0_i32 = arith.constant 0 : i32
    %c0_i32_0 = arith.constant 0 : i32
    return %arg0, %c0_i32 : i32, i32
  }
}

module attributes {stable_mosaic.version = 11 : i64} {
  func.func @_deconv_conv1x1_bn_relu_kernel(%arg0: i32, %arg1: memref<128x512xbf16, #tpu.memory_space<vmem>>, %arg2: memref<512x512xbf16, #tpu.memory_space<vmem>>, %arg3: memref<512x128xbf16, #tpu.memory_space<vmem>>, %arg4: memref<1x128xf32, #tpu.memory_space<vmem>>, %arg5: memref<128x128xf32, #tpu.memory_space<vmem>>) attributes {dimension_semantics = [#tpu.dimension_semantics<parallel>], iteration_bounds = array<i64: 1>, scalar_prefetch = 0 : i64, scratch_operands = 0 : i64, tpu.core_type = #tpu.core_type<tc>, window_params = [{transform_indices = @transform_0, window_bounds = array<i64: 128, 512>}, {pipeline_mode = #tpu.pipeline_mode<synchronous>, transform_indices = @transform_1, window_bounds = array<i64: 512, 512>}, {pipeline_mode = #tpu.pipeline_mode<synchronous>, transform_indices = @transform_2, window_bounds = array<i64: 512, 128>}, {pipeline_mode = #tpu.pipeline_mode<synchronous>, transform_indices = @transform_3, window_bounds = array<i64: 1, 128>}, {transform_indices = @transform_4, window_bounds = array<i64: 128, 128>}]} {
    %c0 = arith.constant 0 : index
    %c0_0 = arith.constant 0 : index
    %0 = vector.load %arg1[%c0, %c0_0] : memref<128x512xbf16, #tpu.memory_space<vmem>>, vector<128x512xbf16>
    %c0_1 = arith.constant 0 : index
    %c0_2 = arith.constant 0 : index
    %1 = vector.load %arg2[%c0_1, %c0_2] : memref<512x512xbf16, #tpu.memory_space<vmem>>, vector<512x512xbf16>
    %cst = arith.constant dense<0.000000e+00> : vector<128x512xf32>
    %2 = tpu.matmul %0, %1, %cst {dimension_numbers = #tpu.dot_dimension_numbers<[1], [0], [0], [1], [0, 0, 1, 1], [], []>} : vector<128x512xbf16>, vector<512x512xbf16>, vector<128x512xf32> -> vector<128x512xf32>
    %3 = arith.truncf %2 : vector<128x512xf32> to vector<128x512xbf16>
    %c0_3 = arith.constant 0 : index
    %c0_4 = arith.constant 0 : index
    %4 = vector.load %arg3[%c0_3, %c0_4] : memref<512x128xbf16, #tpu.memory_space<vmem>>, vector<512x128xbf16>
    %cst_5 = arith.constant dense<0.000000e+00> : vector<128x128xf32>
    %5 = tpu.matmul %3, %4, %cst_5 {dimension_numbers = #tpu.dot_dimension_numbers<[1], [0], [0], [1], [0, 0, 1, 1], [], []>} : vector<128x512xbf16>, vector<512x128xbf16>, vector<128x128xf32> -> vector<128x128xf32>
    %c0_6 = arith.constant 0 : index
    %c0_7 = arith.constant 0 : index
    %6 = vector.load %arg4[%c0_6, %c0_7] : memref<1x128xf32, #tpu.memory_space<vmem>>, vector<1x128xf32>
    %7 = vector.broadcast %6 : vector<1x128xf32> to vector<128x128xf32>
    %8 = arith.addf %5, %7 : vector<128x128xf32>
    %cst_8 = arith.constant 0.000000e+00 : f32
    %9 = vector.broadcast %cst_8 : f32 to vector<128x128xf32>
    %10 = arith.maximumf %8, %9 : vector<128x128xf32>
    %c0_9 = arith.constant 0 : index
    %c0_10 = arith.constant 0 : index
    %11 = vector.load %arg5[%c0_9, %c0_10] : memref<128x128xf32, #tpu.memory_space<vmem>>, vector<128x128xf32>
    tpu.vector_store %arg5[%c0_9, %c0_10], %10 {strides = array<i32>} : memref<128x128xf32, #tpu.memory_space<vmem>>, vector<128x128xf32>,
    return
  }
  func.func @transform_0(%arg0: i32) -> (i32, i32) {
    %c0_i32 = arith.constant 0 : i32
    %c0_i32_0 = arith.constant 0 : i32
    return %arg0, %c0_i32 : i32, i32
  }
  func.func @transform_1(%arg0: i32) -> (i32, i32) {
    %c0_i32 = arith.constant 0 : i32
    %c0_i32_0 = arith.constant 0 : i32
    %c0_i32_1 = arith.constant 0 : i32
    return %c0_i32, %c0_i32_0 : i32, i32
  }
  func.func @transform_2(%arg0: i32) -> (i32, i32) {
    %c0_i32 = arith.constant 0 : i32
    %c0_i32_0 = arith.constant 0 : i32
    %c0_i32_1 = arith.constant 0 : i32
    return %c0_i32, %c0_i32_0 : i32, i32
  }
  func.func @transform_3(%arg0: i32) -> (i32, i32) {
    %c0_i32 = arith.constant 0 : i32
    %c0_i32_0 = arith.constant 0 : i32
    %c0_i32_1 = arith.constant 0 : i32
    return %c0_i32, %c0_i32_0 : i32, i32
  }
  func.func @transform_4(%arg0: i32) -> (i32, i32) {
    %c0_i32 = arith.constant 0 : i32
    %c0_i32_0 = arith.constant 0 : i32
    return %arg0, %c0_i32 : i32, i32
  }
}

</mosaic_0001>

<bundles_post_ra>
// kernel: tile.8
= control target key start
LH: loop header
LB: loop body
LE: loop exit
PB: predicated region body
PF: predicated region fallthrough
CT: control target
= control target key end

     0   :  { %s22_s0 = inlined_call_operand.vmem [shape: f32[32], index: 0, kind: input, shape index: {}]   ;;  %s23_s1 = inlined_call_operand.vmem [shape: f32[4,32], index: 1, kind: output, shape index: {}]  }
   0x1   :  { %v4_v0 = vld [vmem:[%s22_s0] ss:$0 sm:$0xff] }
   0x2   :  { %5 = vst [vmem:[%s23_s1] sm:$0xf] %v4_v0 }

// kernel: tile.9
= control target key start
LH: loop header
LB: loop body
LE: loop exit
PB: predicated region body
PF: predicated region fallthrough
CT: control target
= control target key end

     0   :  { %vm7_vm0 = vcmask 261120   ;;  %s37_s8 = smov 32   ;;  %s38_s9 = smov 64   ;;  %vm13_vm1 = vcmask 1048320   ;;  %vm19_vm2 = vcmask 785920   ;;  %vm25_vm3 = vcmask 523520   ;;  %s55_s0 = inlined_call_operand.vmem [shape: f32[4,32], index: 0, kind: input, shape index: {}]   ;;  %s56_s1 = inlined_call_operand.vmem [shape: f32[1,128], index: 1, kind: output, shape index: {}]  }
   0x1   :  { %v4_v0 = vld [vmem:[%s55_s0] sm:$0xf]  ;;  %s36_s0 = smov 96  }
   0x2   :  { %5 = vst [vmem:[#allocation1] sm:$0xf] %v4_v0 }
   0x9   :  { %v10_v1 = vld [vmem:[#allocation1 + $0x3] sm:$0x1]   ;;  %v22_v2 = vld [vmem:[#allocation1 + $0x1] sm:$0x1]   ;;  %v6_v3 = vld [vmem:[#allocation1] sm:$0x1]  }
   0xa   :  { %11 = vrot.lane.b32.xlu0 %v10_v1, %s36_s0  ;;  %23 = vrot.lane.b32.xlu1 %v22_v2, %s37_s8  ;;  %v16_v4 = vld [vmem:[#allocation1 + $0x2] sm:$0x1]   ;;  %8 = vst.msk [vmem:[#allocation0] sm:$0x1] %vm7_vm0, %v6_v3  }
   0xe   :  { %17 = vrot.lane.b32.xlu0 %v16_v4, %s38_s9 }
  0x7c   :  { %v12_v5 = vpop.permute.xlu0 %11   ;;  %v24_v6 = vpop.permute.xlu1 %23  }
  0x7d   :  { %14 = vst.msk [vmem:[#allocation0] sm:$0x1] %vm13_vm1, %v12_v5  }
  0x80   :  { %v18_v7 = vpop.permute.xlu0 %17  }
  0x81   :  { %20 = vst.msk [vmem:[#allocation0] sm:$0x1] %vm19_vm2, %v18_v7  }
  0x82   :  { %26 = vst.msk [vmem:[#allocation0] sm:$0x1] %vm25_vm3, %v24_v6  }
  0x89   :  { %v30_v8 = vld [vmem:[#allocation0] sm:$0x1] }
  0x8a   :  { %32 = vst [vmem:[%s56_s1] sm:$0x1] %v30_v8 }

// kernel: decoder_forward.2
= control target key start
LH: loop header
LB: loop body
LE: loop exit
PB: predicated region body
PF: predicated region fallthrough
CT: control target
= control target key end

     0   :  { %vm86_vm0 = vcmask 130048   ;;  %s525_s1 = inlined_call_operand.vmem [shape: bf16[16,128], index: 1, kind: input, shape index: {}]   ;;  %s526_s0 = inlined_call_operand.vmem [shape: bf16[128,16], index: 0, kind: input, shape index: {}]   ;;  %s527_s2 = inlined_call_operand.vmem [shape: f32[1,128], index: 2, kind: input, shape index: {}]   ;;  %s528_s3 = inlined_call_operand.vmem [shape: bf16[128,128], index: 3, kind: output, shape index: {}]  }
   0x1   :  { %v434_v0 = vld [vmem:[%s525_s1] sm:$0xff]   ;;  %v437_v3 = vld [vmem:[%s526_s0 + $0x8] sm:$0xff]   ;;  %v439_v5 = vld [vmem:[%s526_s0 + $0x10] sm:$0xff]  }
   0x2   :  { %v435_v1 = vld [vmem:[%s526_s0] sm:$0xff]   ;;  %414 = vmatprep.subr.bf16.mxu0 %v434_v0  ;;  %432 = vmatprep.subr.bf16.mxu1 %v434_v0  ;;  %v438_v4 = vld [vmem:[%s526_s0 + $0x28] sm:$0xff]   ;;  %v440_v6 = vld [vmem:[%s526_s0 + $0x30] sm:$0xff]  }
   0x3   :  { %v436_v2 = vld [vmem:[%s526_s0 + $0x20] sm:$0xff]   ;;  %415 = vmatpush3.bf16.msra.mxu0 %v434_v0  ;;  %433 = vmatpush3.bf16.msra.mxu1 %v434_v0  ;;  %v441_v7 = vld [vmem:[%s526_s0 + $0x18] sm:$0xff]  }
   0x4   :  { %416 = vmatprep.mubr.msk.bf16.mxu0 %vm86_vm0, %v435_v1  ;;  %424 = vmatprep.mubr.msk.bf16.mxu1 %vm86_vm0, %v436_v2  ;;  %v442_v8 = vld [vmem:[%s526_s0 + $0x38] sm:$0xff]   ;;  %v308_v9 = vld [vmem:[%s527_s2] ss:$0 sm:$0xff] }
   0x6   :  { %417 = vmatmul.mubr.msk.bf16.vlgmr.msra.gmra.mrb[0].mxu0 %vm86_vm0, %v437_v3  ;;  %425 = vmatmul.mubr.msk.bf16.vlgmr.msra.gmra.mrb[0].mxu1 %vm86_vm0, %v438_v4 }
   0x7   :  { %420 = vmatprep.mubr.msk.bf16.mxu0 %vm86_vm0, %v439_v5  ;;  %428 = vmatprep.mubr.msk.bf16.mxu1 %vm86_vm0, %v440_v6 }
   0xe   :  { %421 = vmatmul.mubr.msk.bf16.gmra.mrb[4].mxu0 %vm86_vm0, %v441_v7  ;;  %429 = vmatmul.mubr.msk.bf16.gmra.mrb[4].mxu1 %vm86_vm0, %v442_v8 }
  0xd9   :  { %v418_v10 = vpop.f32.mrb[0].mxu0  ;;  %v426_v11 = vpop.f32.mrb[0].mxu1 }
  0xda   :  { %v154_v12 = vadd.f32 %v418_v10, %v308_v9  ;;  %v186_v13 = vadd.f32 %v426_v11, %v308_v9  ;;  %v145_v14 = vpop.f32.mrb[1].mxu0  ;;  %v177_v15 = vpop.f32.mrb[1].mxu1 }
  0xdb   :  { %v146_v16 = vadd.f32 %v308_v9, %v145_v14  ;;  %v178_v17 = vadd.f32 %v308_v9, %v177_v15  ;;  %v419_v18 = vpop.f32.mrb[2].mxu0  ;;  %v427_v19 = vpop.f32.mrb[2].mxu1 }
  0xdc   :  { %v157_v20 = vadd.f32 %v419_v18, %v308_v9  ;;  %v189_v21 = vadd.f32 %v427_v19, %v308_v9  ;;  %v148_v22 = vpop.f32.mrb[3].mxu0  ;;  %v180_v23 = vpop.f32.mrb[3].mxu1  ;;  %v210_v26 = vmax.f32 %v154_v12, 0.0  ;;  %v218_v27 = vmax.f32 %v186_v13, 0.0 }
  0xdd   :  { %v149_v24 = vadd.f32 %v308_v9, %v148_v22  ;;  %v181_v25 = vadd.f32 %v308_v9, %v180_v23  ;;  %v208_v30 = vmax.f32 %v146_v16, 0.0  ;;  %v216_v31 = vmax.f32 %v178_v17, 0.0 }
  0xde   :  { %v211_v28 = vmax.f32 %v157_v20, 0.0  ;;  %v219_v29 = vmax.f32 %v189_v21, 0.0 }
  0xdf   :  { %v209_v32 = vmax.f32 %v149_v24, 0.0  ;;  %v217_v33 = vmax.f32 %v181_v25, 0.0 }
  0xe0   :  { %v366_v34 = vpack.c.bf16 %v211_v28, %v210_v26  ;;  %v386_v35 = vpack.c.bf16 %v219_v29, %v218_v27 }
  0xe1   :  { %v361_v36 = vpack.c.bf16 %v209_v32, %v208_v30  ;;  %v381_v37 = vpack.c.bf16 %v217_v33, %v216_v31  ;;  %v422_v38 = vpop.f32.mrb[4].mxu0  ;;  %v430_v39 = vpop.f32.mrb[4].mxu1 }
  0xe2   :  { %398 = vst [vmem:[%s528_s3 + $0x8] sm:$0xff] %v366_v34   ;;  %402 = vst [vmem:[%s528_s3 + $0x28] sm:$0xff] %v386_v35   ;;  %v170_v40 = vadd.f32 %v422_v38, %v308_v9  ;;  %v202_v41 = vadd.f32 %v430_v39, %v308_v9  ;;  %v161_v42 = vpop.f32.mrb[5].mxu0  ;;  %v193_v43 = vpop.f32.mrb[5].mxu1 }
  0xe3   :  { %362 = vst [vmem:[%s528_s3] sm:$0xff] %v361_v36   ;;  %401 = vst [vmem:[%s528_s3 + $0x20] sm:$0xff] %v381_v37   ;;  %v162_v44 = vadd.f32 %v308_v9, %v161_v42  ;;  %v194_v45 = vadd.f32 %v308_v9, %v193_v43  ;;  %v423_v46 = vpop.f32.mrb[6].mxu0  ;;  %v431_v47 = vpop.f32.mrb[6].mxu1 }
  0xe4   :  { %v173_v48 = vadd.f32 %v423_v46, %v308_v9  ;;  %v205_v49 = vadd.f32 %v431_v47, %v308_v9  ;;  %v164_v50 = vpop.f32.mrb[7].mxu0  ;;  %v196_v51 = vpop.f32.mrb[7].mxu1  ;;  %v214_v54 = vmax.f32 %v170_v40, 0.0  ;;  %v222_v55 = vmax.f32 %v202_v41, 0.0 }
  0xe5   :  { %v165_v52 = vadd.f32 %v308_v9, %v164_v50  ;;  %v197_v53 = vadd.f32 %v308_v9, %v196_v51  ;;  %v212_v58 = vmax.f32 %v162_v44, 0.0  ;;  %v220_v59 = vmax.f32 %v194_v45, 0.0 }
  0xe6   :  { %v215_v56 = vmax.f32 %v173_v48, 0.0  ;;  %v223_v57 = vmax.f32 %v205_v49, 0.0 }
  0xe7   :  { %v213_v60 = vmax.f32 %v165_v52, 0.0  ;;  %v221_v61 = vmax.f32 %v197_v53, 0.0 }
  0xe8   :  { %v376_v62 = vpack.c.bf16 %v215_v56, %v214_v54  ;;  %v396_v63 = vpack.c.bf16 %v223_v57, %v222_v55 }
  0xe9   :  { %v371_v0 = vpack.c.bf16 %v213_v60, %v212_v58  ;;  %v391_v1 = vpack.c.bf16 %v221_v61, %v220_v59 }
  0xea   :  { %400 = vst [vmem:[%s528_s3 + $0x18] sm:$0xff] %v376_v62   ;;  %404 = vst [vmem:[%s528_s3 + $0x38] sm:$0xff] %v396_v63  }
  0xeb   :  { %399 = vst [vmem:[%s528_s3 + $0x10] sm:$0xff] %v371_v0   ;;  %403 = vst [vmem:[%s528_s3 + $0x30] sm:$0xff] %v391_v1  }

// kernel: decoder_forward.3
= control target key start
LH: loop header
LB: loop body
LE: loop exit
PB: predicated region body
PF: predicated region fallthrough
CT: control target
= control target key end

     0   :  { %s3282_s1 = inlined_call_operand.vmem [shape: bf16[512,512], index: 1, kind: input, shape index: {}]   ;;  %s3283_s0 = inlined_call_operand.vmem [shape: bf16[128,512], index: 0, kind: input, shape index: {}]   ;;  %s3284_s2 = inlined_call_operand.vmem [shape: bf16[512,128], index: 2, kind: input, shape index: {}]   ;;  %s3285_s3 = inlined_call_operand.vmem [shape: f32[1,128], index: 3, kind: input, shape index: {}]   ;;  %s3286_s4 = inlined_call_operand.vmem [shape: f32[128,128], index: 4, kind: output, shape index: {}]  }
   0x1   :  { %v2340_v0 = vld [vmem:[%s3282_s1 + $0x4] ss:$16 sps:$4 sm:$0xff]   ;;  %v2342_v1 = vld [vmem:[%s3282_s1 + $0xc] ss:$16 sps:$4 sm:$0xff]   ;;  %v2344_v2 = vld [vmem:[%s3282_s1] ss:$16 sps:$4 sm:$0xff]  }
   0x2   :  { %978 = vmatprep.subr.bf16.mxu0 %v2340_v0  ;;  %v2345_v3 = vld [vmem:[%s3282_s1 + $0x8] ss:$16 sps:$4 sm:$0xff]   ;;  %1204 = vmatprep.subr.bf16.mxu1 %v2342_v1  ;;  %v2346_v4 = vld [vmem:[%s3282_s1 + $0x24] ss:$16 sps:$4 sm:$0xff]   ;;  %v2348_v5 = vld [vmem:[%s3282_s1 + $0x2c] ss:$16 sps:$4 sm:$0xff]  }
   0x3   :  { %979 = vmatpush1.bf16.msra.mxu0 %v2344_v2  ;;  %1205 = vmatpush1.bf16.msra.mxu1 %v2345_v3  ;;  %v2350_v6 = vld [vmem:[%s3282_s1 + $0x20] ss:$16 sps:$4 sm:$0xff]   ;;  %v2351_v7 = vld [vmem:[%s3282_s1 + $0x28] ss:$16 sps:$4 sm:$0xff]   ;;  %v2352_v8 = vld [vmem:[%s3282_s1 + $0x44] ss:$16 sps:$4 sm:$0xff]  }
   0x4   :  { %980 = vmatprep.subr.bf16.mxu0 %v2346_v4  ;;  %1206 = vmatprep.subr.bf16.mxu1 %v2348_v5  ;;  %v2354_v9 = vld [vmem:[%s3282_s1 + $0x4c] ss:$16 sps:$4 sm:$0xff]   ;;  %v2356_v10 = vld [vmem:[%s3282_s1 + $0x40] ss:$16 sps:$4 sm:$0xff]   ;;  %v2357_v11 = vld [vmem:[%s3282_s1 + $0x48] ss:$16 sps:$4 sm:$0xff]  }
   0x5   :  { %v2358_v12 = vld [vmem:[%s3282_s1 + $0x64] ss:$16 sps:$4 sm:$0xff]   ;;  %v2360_v13 = vld [vmem:[%s3282_s1 + $0x6c] ss:$16 sps:$4 sm:$0xff]   ;;  %v2362_v14 = vld [vmem:[%s3282_s1 + $0x60] ss:$16 sps:$4 sm:$0xff]  }
   0x6   :  { %v2363_v15 = vld [vmem:[%s3282_s1 + $0x68] ss:$16 sps:$4 sm:$0xff]   ;;  %v2364_v16 = vld [vmem:[%s3282_s1 + $0x84] ss:$16 sps:$4 sm:$0xff]   ;;  %v2366_v17 = vld [vmem:[%s3282_s1 + $0x8c] ss:$16 sps:$4 sm:$0xff]  }
   0x7   :  { %981 = vmatpush1.bf16.msra.mxu0 %v2350_v6  ;;  %1207 = vmatpush1.bf16.msra.mxu1 %v2351_v7  ;;  %v2368_v18 = vld [vmem:[%s3282_s1 + $0x80] ss:$16 sps:$4 sm:$0xff]   ;;  %v2369_v19 = vld [vmem:[%s3282_s1 + $0x88] ss:$16 sps:$4 sm:$0xff]   ;;  %v2370_v20 = vld [vmem:[%s3282_s1 + $0xa4] ss:$16 sps:$4 sm:$0xff]  }
   0x8   :  { %982 = vmatprep.subr.bf16.mxu0 %v2352_v8  ;;  %1208 = vmatprep.subr.bf16.mxu1 %v2354_v9  ;;  %v2372_v21 = vld [vmem:[%s3282_s1 + $0xac] ss:$16 sps:$4 sm:$0xff]   ;;  %v2374_v22 = vld [vmem:[%s3282_s1 + $0xa0] ss:$16 sps:$4 sm:$0xff]   ;;  %v2375_v23 = vld [vmem:[%s3282_s1 + $0xa8] ss:$16 sps:$4 sm:$0xff]  }
   0x9   :  { %v2376_v24 = vld [vmem:[%s3282_s1 + $0xc4] ss:$16 sps:$4 sm:$0xff]   ;;  %v2378_v25 = vld [vmem:[%s3282_s1 + $0xcc] ss:$16 sps:$4 sm:$0xff]   ;;  %v2380_v26 = vld [vmem:[%s3282_s1 + $0xc0] ss:$16 sps:$4 sm:$0xff]  }
   0xa   :  { %v2381_v27 = vld [vmem:[%s3282_s1 + $0xc8] ss:$16 sps:$4 sm:$0xff]   ;;  %v2382_v28 = vld [vmem:[%s3282_s1 + $0xe4] ss:$16 sps:$4 sm:$0xff]   ;;  %v2384_v29 = vld [vmem:[%s3282_s1 + $0xec] ss:$16 sps:$4 sm:$0xff]  }
   0xb   :  { %983 = vmatpush1.bf16.msra.mxu0 %v2356_v10  ;;  %1209 = vmatpush1.bf16.msra.mxu1 %v2357_v11  ;;  %v2386_v30 = vld [vmem:[%s3282_s1 + $0xe0] ss:$16 sps:$4 sm:$0xff]   ;;  %v2387_v31 = vld [vmem:[%s3282_s1 + $0xe8] ss:$16 sps:$4 sm:$0xff]   ;;  %v2388_v32 = vld [vmem:[%s3282_s1 + $0x104] ss:$16 sps:$4 sm:$0xff]  }
   0xc   :  { %984 = vmatprep.subr.bf16.mxu0 %v2358_v12  ;;  %1210 = vmatprep.subr.bf16.mxu1 %v2360_v13  ;;  %v2390_v33 = vld [vmem:[%s3282_s1 + $0x10c] ss:$16 sps:$4 sm:$0xff]   ;;  %v2392_v34 = vld [vmem:[%s3282_s1 + $0x100] ss:$16 sps:$4 sm:$0xff]   ;;  %v2393_v35 = vld [vmem:[%s3282_s1 + $0x108] ss:$16 sps:$4 sm:$0xff]  }
   0xd   :  { %v2394_v36 = vld [vmem:[%s3282_s1 + $0x124] ss:$16 sps:$4 sm:$0xff]   ;;  %v2396_v37 = vld [vmem:[%s3282_s1 + $0x12c] ss:$16 sps:$4 sm:$0xff]   ;;  %v2398_v38 = vld [vmem:[%s3282_s1 + $0x120] ss:$16 sps:$4 sm:$0xff]  }
   0xe   :  { %v2399_v39 = vld [vmem:[%s3282_s1 + $0x128] ss:$16 sps:$4 sm:$0xff]   ;;  %v2400_v40 = vld [vmem:[%s3282_s1 + $0x144] ss:$16 sps:$4 sm:$0xff]   ;;  %v2402_v41 = vld [vmem:[%s3282_s1 + $0x14c] ss:$16 sps:$4 sm:$0xff]  }
   0xf   :  { %985 = vmatpush1.bf16.msra.mxu0 %v2362_v14  ;;  %1211 = vmatpush1.bf16.msra.mxu1 %v2363_v15  ;;  %v2404_v42 = vld [vmem:[%s3282_s1 + $0x140] ss:$16 sps:$4 sm:$0xff]   ;;  %v2405_v43 = vld [vmem:[%s3282_s1 + $0x148] ss:$16 sps:$4 sm:$0xff]   ;;  %v2406_v44 = vld [vmem:[%s3282_s1 + $0x164] ss:$16 sps:$4 sm:$0xff]  }
  0x10   :  { %986 = vmatprep.subr.bf16.mxu0 %v2364_v16  ;;  %1212 = vmatprep.subr.bf16.mxu1 %v2366_v17  ;;  %v2408_v45 = vld [vmem:[%s3282_s1 + $0x16c] ss:$16 sps:$4 sm:$0xff]   ;;  %v2410_v46 = vld [vmem:[%s3282_s1 + $0x160] ss:$16 sps:$4 sm:$0xff]   ;;  %v2411_v47 = vld [vmem:[%s3282_s1 + $0x168] ss:$16 sps:$4 sm:$0xff]  }
  0x11   :  { %v2438_v48 = vld [vmem:[%s3283_s0 + $0x4] ss:$16 sps:$4 sm:$0xff]   ;;  %v2414_v50 = vld [vmem:[%s3282_s1 + $0x18c] ss:$16 sps:$4 sm:$0xff]   ;;  %v2416_v51 = vld [vmem:[%s3282_s1 + $0x180] ss:$16 sps:$4 sm:$0xff]  }
  0x12   :  { %v2412_v49 = vld [vmem:[%s3282_s1 + $0x184] ss:$16 sps:$4 sm:$0xff]   ;;  %1010 = vmatprep.mubr.bf16.mxu0 %v2438_v48  ;;  %1236 = vmatprep.mubr.bf16.mxu1 %v2438_v48  ;;  %v2417_v52 = vld [vmem:[%s3282_s1 + $0x188] ss:$16 sps:$4 sm:$0xff]   ;;  %v2420_v54 = vld [vmem:[%s3282_s1 + $0x1ac] ss:$16 sps:$4 sm:$0xff]  }
  0x13   :  { %987 = vmatpush1.bf16.msra.mxu0 %v2368_v18  ;;  %1213 = vmatpush1.bf16.msra.mxu1 %v2369_v19  ;;  %v2418_v53 = vld [vmem:[%s3282_s1 + $0x1a4] ss:$16 sps:$4 sm:$0xff]   ;;  %v2422_v55 = vld [vmem:[%s3282_s1 + $0x1a0] ss:$16 sps:$4 sm:$0xff]   ;;  %v2423_v56 = vld [vmem:[%s3282_s1 + $0x1a8] ss:$16 sps:$4 sm:$0xff]  }
  0x14   :  { %988 = vmatprep.subr.bf16.mxu0 %v2370_v20  ;;  %1214 = vmatprep.subr.bf16.mxu1 %v2372_v21  ;;  %v2424_v57 = vld [vmem:[%s3282_s1 + $0x1c4] ss:$16 sps:$4 sm:$0xff]   ;;  %v2426_v58 = vld [vmem:[%s3282_s1 + $0x1cc] ss:$16 sps:$4 sm:$0xff]   ;;  %v2428_v59 = vld [vmem:[%s3282_s1 + $0x1c0] ss:$16 sps:$4 sm:$0xff]  }
  0x15   :  { %v2429_v60 = vld [vmem:[%s3282_s1 + $0x1c8] ss:$16 sps:$4 sm:$0xff]   ;;  %v2430_v61 = vld [vmem:[%s3282_s1 + $0x1e4] ss:$16 sps:$4 sm:$0xff]   ;;  %v2432_v62 = vld [vmem:[%s3282_s1 + $0x1ec] ss:$16 sps:$4 sm:$0xff]  }
  0x16   :  { %v2434_v63 = vld [vmem:[%s3282_s1 + $0x1e0] ss:$16 sps:$4 sm:$0xff]   ;;  %v2435_v0 = vld [vmem:[%s3282_s1 + $0x1e8] ss:$16 sps:$4 sm:$0xff]   ;;  %v2441_v1 = vld [vmem:[%s3282_s1 + $0x204] ss:$16 sps:$4 sm:$0xff]  }
  0x17   :  { %989 = vmatpush1.bf16.msra.mxu0 %v2374_v22  ;;  %1215 = vmatpush1.bf16.msra.mxu1 %v2375_v23  ;;  %v2444_v2 = vld [vmem:[%s3282_s1 + $0x20c] ss:$16 sps:$4 sm:$0xff]   ;;  %v2436_v3 = vld [vmem:[%s3283_s0] ss:$16 sps:$4 sm:$0xff]   ;;  %v2442_v5 = vld [vmem:[%s3282_s1 + $0x208] ss:$16 sps:$4 sm:$0xff]  }
  0x18   :  { %990 = vmatprep.subr.bf16.mxu0 %v2376_v24  ;;  %1216 = vmatprep.subr.bf16.mxu1 %v2378_v25  ;;  %v2439_v4 = vld [vmem:[%s3282_s1 + $0x200] ss:$16 sps:$4 sm:$0xff]   ;;  %v2447_v6 = vld [vmem:[%s3282_s1 + $0x224] ss:$16 sps:$4 sm:$0xff]   ;;  %v2450_v7 = vld [vmem:[%s3282_s1 + $0x22c] ss:$16 sps:$4 sm:$0xff]  }
  0x19   :  { %v2451_v8 = vld [vmem:[%s3283_s0 + $0x24] ss:$16 sps:$4 sm:$0xff]   ;;  %v2445_v9 = vld [vmem:[%s3282_s1 + $0x220] ss:$16 sps:$4 sm:$0xff]   ;;  %v2448_v10 = vld [vmem:[%s3282_s1 + $0x228] ss:$16 sps:$4 sm:$0xff]  }
  0x1a   :  { %v2456_v11 = vld [vmem:[%s3282_s1 + $0x244] ss:$16 sps:$4 sm:$0xff]   ;;  %v2459_v12 = vld [vmem:[%s3282_s1 + $0x24c] ss:$16 sps:$4 sm:$0xff]   ;;  %v2453_v13 = vld [vmem:[%s3283_s0 + $0x20] ss:$16 sps:$4 sm:$0xff]  }
  0x1b   :  { %991 = vmatpush1.bf16.msra.mxu0 %v2380_v26  ;;  %1217 = vmatpush1.bf16.msra.mxu1 %v2381_v27  ;;  %v2454_v14 = vld [vmem:[%s3282_s1 + $0x240] ss:$16 sps:$4 sm:$0xff]   ;;  %v2457_v15 = vld [vmem:[%s3282_s1 + $0x248] ss:$16 sps:$4 sm:$0xff]   ;;  %v2462_v16 = vld [vmem:[%s3282_s1 + $0x264] ss:$16 sps:$4 sm:$0xff]  }
  0x1c   :  { %992 = vmatprep.subr.bf16.mxu0 %v2382_v28  ;;  %1218 = vmatprep.subr.bf16.mxu1 %v2384_v29  ;;  %v2465_v17 = vld [vmem:[%s3282_s1 + $0x26c] ss:$16 sps:$4 sm:$0xff]   ;;  %v2466_v18 = vld [vmem:[%s3283_s0 + $0x44] ss:$16 sps:$4 sm:$0xff]   ;;  %v2460_v19 = vld [vmem:[%s3282_s1 + $0x260] ss:$16 sps:$4 sm:$0xff]  }
  0x1d   :  { %v2463_v20 = vld [vmem:[%s3282_s1 + $0x268] ss:$16 sps:$4 sm:$0xff]   ;;  %v2471_v21 = vld [vmem:[%s3282_s1 + $0x284] ss:$16 sps:$4 sm:$0xff]   ;;  %v2474_v22 = vld [vmem:[%s3282_s1 + $0x28c] ss:$16 sps:$4 sm:$0xff]  }
  0x1e   :  { %v2468_v23 = vld [vmem:[%s3283_s0 + $0x40] ss:$16 sps:$4 sm:$0xff]   ;;  %v2472_v25 = vld [vmem:[%s3282_s1 + $0x288] ss:$16 sps:$4 sm:$0xff]   ;;  %v2477_v26 = vld [vmem:[%s3282_s1 + $0x2a4] ss:$16 sps:$4 sm:$0xff]  }
  0x1f   :  { %993 = vmatpush1.bf16.msra.mxu0 %v2386_v30  ;;  %1219 = vmatpush1.bf16.msra.mxu1 %v2387_v31  ;;  %v2469_v24 = vld [vmem:[%s3282_s1 + $0x280] ss:$16 sps:$4 sm:$0xff]   ;;  %v2480_v27 = vld [vmem:[%s3282_s1 + $0x2ac] ss:$16 sps:$4 sm:$0xff]   ;;  %v2481_v28 = vld [vmem:[%s3283_s0 + $0x64] ss:$16 sps:$4 sm:$0xff]  }
  0x20   :  { %994 = vmatprep.subr.bf16.mxu0 %v2388_v32  ;;  %1220 = vmatprep.subr.bf16.mxu1 %v2390_v33  ;;  %v2475_v29 = vld [vmem:[%s3282_s1 + $0x2a0] ss:$16 sps:$4 sm:$0xff]   ;;  %v2478_v30 = vld [vmem:[%s3282_s1 + $0x2a8] ss:$16 sps:$4 sm:$0xff]   ;;  %v2486_v31 = vld [vmem:[%s3282_s1 + $0x2c4] ss:$16 sps:$4 sm:$0xff]  }
  0x21   :  { %v2489_v32 = vld [vmem:[%s3282_s1 + $0x2cc] ss:$16 sps:$4 sm:$0xff]   ;;  %v2483_v33 = vld [vmem:[%s3283_s0 + $0x60] ss:$16 sps:$4 sm:$0xff]   ;;  %v2511_v48 = vld [vmem:[%s3283_s0 + $0xa4] ss:$16 sps:$4 sm:$0xff]  }
  0x23   :  { %995 = vmatpush1.bf16.msra.mxu0 %v2392_v34  ;;  %1221 = vmatpush1.bf16.msra.mxu1 %v2393_v35  ;;  %v2484_v34 = vld [vmem:[%s3282_s1 + $0x2c0] ss:$16 sps:$4 sm:$0xff]   ;;  %v2487_v35 = vld [vmem:[%s3282_s1 + $0x2c8] ss:$16 sps:$4 sm:$0xff]  }
  0x24   :  { %996 = vmatprep.subr.bf16.mxu0 %v2394_v36  ;;  %1222 = vmatprep.subr.bf16.mxu1 %v2396_v37  ;;  %v2492_v36 = vld [vmem:[%s3282_s1 + $0x2e4] ss:$16 sps:$4 sm:$0xff]   ;;  %v2495_v37 = vld [vmem:[%s3282_s1 + $0x2ec] ss:$16 sps:$4 sm:$0xff]  }
  0x27   :  { %997 = vmatpush1.bf16.msra.mxu0 %v2398_v38  ;;  %1223 = vmatpush1.bf16.msra.mxu1 %v2399_v39  ;;  %v2496_v38 = vld [vmem:[%s3283_s0 + $0x84] ss:$16 sps:$4 sm:$0xff]   ;;  %v2490_v39 = vld [vmem:[%s3282_s1 + $0x2e0] ss:$16 sps:$4 sm:$0xff]  }
  0x28   :  { %998 = vmatprep.subr.bf16.mxu0 %v2400_v40  ;;  %1224 = vmatprep.subr.bf16.mxu1 %v2402_v41  ;;  %v2493_v40 = vld [vmem:[%s3282_s1 + $0x2e8] ss:$16 sps:$4 sm:$0xff]   ;;  %v2501_v41 = vld [vmem:[%s3282_s1 + $0x304] ss:$16 sps:$4 sm:$0xff]  }
  0x2b   :  { %999 = vmatpush1.bf16.msra.mxu0 %v2404_v42  ;;  %1225 = vmatpush1.bf16.msra.mxu1 %v2405_v43  ;;  %v2504_v42 = vld [vmem:[%s3282_s1 + $0x30c] ss:$16 sps:$4 sm:$0xff]   ;;  %v2498_v43 = vld [vmem:[%s3283_s0 + $0x80] ss:$16 sps:$4 sm:$0xff]  }
  0x2c   :  { %1000 = vmatprep.subr.bf16.mxu0 %v2406_v44  ;;  %1226 = vmatprep.subr.bf16.mxu1 %v2408_v45  ;;  %v2499_v44 = vld [vmem:[%s3282_s1 + $0x300] ss:$16 sps:$4 sm:$0xff]   ;;  %v2502_v45 = vld [vmem:[%s3282_s1 + $0x308] ss:$16 sps:$4 sm:$0xff]  }
  0x2f   :  { %1001 = vmatpush1.bf16.msra.mxu0 %v2410_v46  ;;  %1227 = vmatpush1.bf16.msra.mxu1 %v2411_v47  ;;  %v2507_v46 = vld [vmem:[%s3282_s1 + $0x324] ss:$16 sps:$4 sm:$0xff]   ;;  %v2510_v47 = vld [vmem:[%s3282_s1 + $0x32c] ss:$16 sps:$4 sm:$0xff]  }
  0x30   :  { %1002 = vmatprep.subr.bf16.mxu0 %v2412_v49  ;;  %1228 = vmatprep.subr.bf16.mxu1 %v2414_v50  ;;  %v2505_v49 = vld [vmem:[%s3282_s1 + $0x320] ss:$16 sps:$4 sm:$0xff]   ;;  %v2508_v50 = vld [vmem:[%s3282_s1 + $0x328] ss:$16 sps:$4 sm:$0xff]  }
  0x33   :  { %1003 = vmatpush1.bf16.msra.mxu0 %v2416_v51  ;;  %1229 = vmatpush1.bf16.msra.mxu1 %v2417_v52  ;;  %v2516_v51 = vld [vmem:[%s3282_s1 + $0x344] ss:$16 sps:$4 sm:$0xff]   ;;  %v2519_v52 = vld [vmem:[%s3282_s1 + $0x34c] ss:$16 sps:$4 sm:$0xff]  }
  0x34   :  { %1004 = vmatprep.subr.bf16.mxu0 %v2418_v53  ;;  %1230 = vmatprep.subr.bf16.mxu1 %v2420_v54  ;;  %v2513_v53 = vld [vmem:[%s3283_s0 + $0xa0] ss:$16 sps:$4 sm:$0xff]  }
  0x35   :  { %v2514_v54 = vld [vmem:[%s3282_s1 + $0x340] ss:$16 sps:$4 sm:$0xff]  }
  0x37   :  { %1005 = vmatpush1.bf16.msra.mxu0 %v2422_v55  ;;  %1231 = vmatpush1.bf16.msra.mxu1 %v2423_v56  ;;  %v2517_v55 = vld [vmem:[%s3282_s1 + $0x348] ss:$16 sps:$4 sm:$0xff]   ;;  %v2522_v56 = vld [vmem:[%s3282_s1 + $0x364] ss:$16 sps:$4 sm:$0xff]  }
  0x38   :  { %1006 = vmatprep.subr.bf16.mxu0 %v2424_v57  ;;  %1232 = vmatprep.subr.bf16.mxu1 %v2426_v58  ;;  %v2525_v57 = vld [vmem:[%s3282_s1 + $0x36c] ss:$16 sps:$4 sm:$0xff]   ;;  %v2520_v58 = vld [vmem:[%s3282_s1 + $0x360] ss:$16 sps:$4 sm:$0xff]  }
  0x3b   :  { %1007 = vmatpush1.bf16.msra.mxu0 %v2428_v59  ;;  %1233 = vmatpush1.bf16.msra.mxu1 %v2429_v60  ;;  %v2526_v59 = vld [vmem:[%s3283_s0 + $0xc4] ss:$16 sps:$4 sm:$0xff]   ;;  %v2523_v60 = vld [vmem:[%s3282_s1 + $0x368] ss:$16 sps:$4 sm:$0xff]  }
  0x3c   :  { %1008 = vmatprep.subr.bf16.mxu0 %v2430_v61  ;;  %1234 = vmatprep.subr.bf16.mxu1 %v2432_v62  ;;  %v2531_v61 = vld [vmem:[%s3282_s1 + $0x384] ss:$16 sps:$4 sm:$0xff]   ;;  %v2528_v62 = vld [vmem:[%s3283_s0 + $0xc0] ss:$16 sps:$4 sm:$0xff]  }
  0x3f   :  { %1009 = vmatpush1.bf16.msra.mxu0 %v2434_v63  ;;  %1235 = vmatpush1.bf16.msra.mxu1 %v2435_v0  ;;  %v2534_v63 = vld [vmem:[%s3282_s1 + $0x38c] ss:$16 sps:$4 sm:$0xff]   ;;  %v2529_v0 = vld [vmem:[%s3282_s1 + $0x380] ss:$16 sps:$4 sm:$0xff]  }
  0x40   :  { %1091 = vmatprep.subr.bf16.mxu0 %v2441_v1  ;;  %1317 = vmatprep.subr.bf16.mxu1 %v2444_v2  ;;  %v2532_v1 = vld [vmem:[%s3282_s1 + $0x388] ss:$16 sps:$4 sm:$0xff]   ;;  %v2537_v2 = vld [vmem:[%s3282_s1 + $0x3a4] ss:$16 sps:$4 sm:$0xff]  }
  0x42   :  { %1011 = vmatmul.mubr.bf16.vlgmr.msra.gmra.mrb[0].mxu0 %v2436_v3  ;;  %1237 = vmatmul.mubr.bf16.vlgmr.msra.gmra.mrb[0].mxu1 %v2436_v3  ;;  %v2540_v3 = vld [vmem:[%s3282_s1 + $0x3ac] ss:$16 sps:$4 sm:$0xff]  }
  0x43   :  { %1092 = vmatpush1.bf16.msra.mxu0 %v2439_v4  ;;  %1318 = vmatpush1.bf16.msra.mxu1 %v2442_v5  ;;  %v2535_v4 = vld [vmem:[%s3282_s1 + $0x3a0] ss:$16 sps:$4 sm:$0xff]   ;;  %v2541_v5 = vld [vmem:[%s3283_s0 + $0xe4] ss:$16 sps:$4 sm:$0xff]  }
  0x44   :  { %1093 = vmatprep.subr.bf16.mxu0 %v2447_v6  ;;  %1319 = vmatprep.subr.bf16.mxu1 %v2450_v7  ;;  %v2538_v6 = vld [vmem:[%s3282_s1 + $0x3a8] ss:$16 sps:$4 sm:$0xff]   ;;  %v2546_v7 = vld [vmem:[%s3282_s1 + $0x3c4] ss:$16 sps:$4 sm:$0xff]  }
  0x45   :  { %1020 = vmatprep.mubr.bf16.mxu0 %v2451_v8  ;;  %1246 = vmatprep.mubr.bf16.mxu1 %v2451_v8  ;;  %v2543_v8 = vld [vmem:[%s3283_s0 + $0xe0] ss:$16 sps:$4 sm:$0xff]  }
  0x47   :  { %1094 = vmatpush1.bf16.msra.mxu0 %v2445_v9  ;;  %1320 = vmatpush1.bf16.msra.mxu1 %v2448_v10  ;;  %v2549_v9 = vld [vmem:[%s3282_s1 + $0x3cc] ss:$16 sps:$4 sm:$0xff]   ;;  %v2544_v10 = vld [vmem:[%s3282_s1 + $0x3c0] ss:$16 sps:$4 sm:$0xff]  }
  0x48   :  { %1095 = vmatprep.subr.bf16.mxu0 %v2456_v11  ;;  %1321 = vmatprep.subr.bf16.mxu1 %v2459_v12  ;;  %v2547_v11 = vld [vmem:[%s3282_s1 + $0x3c8] ss:$16 sps:$4 sm:$0xff]   ;;  %v2552_v12 = vld [vmem:[%s3282_s1 + $0x3e4] ss:$16 sps:$4 sm:$0xff]  }
  0x4a   :  { %1021 = vmatmul.mubr.bf16.gmra.mrb[4].mxu0 %v2453_v13  ;;  %1247 = vmatmul.mubr.bf16.gmra.mrb[4].mxu1 %v2453_v13  ;;  %v2555_v13 = vld [vmem:[%s3282_s1 + $0x3ec] ss:$16 sps:$4 sm:$0xff]  }
  0x4b   :  { %1096 = vmatpush1.bf16.msra.mxu0 %v2454_v14  ;;  %1322 = vmatpush1.bf16.msra.mxu1 %v2457_v15  ;;  %v2550_v14 = vld [vmem:[%s3282_s1 + $0x3e0] ss:$16 sps:$4 sm:$0xff]   ;;  %v2558_v15 = vld [vmem:[%s3283_s0 + $0xc] ss:$16 sps:$4 sm:$0xff]  }
  0x4c   :  { %1097 = vmatprep.subr.bf16.mxu0 %v2462_v16  ;;  %1323 = vmatprep.subr.bf16.mxu1 %v2465_v17  ;;  %v2553_v16 = vld [vmem:[%s3282_s1 + $0x3e8] ss:$16 sps:$4 sm:$0xff]   ;;  %v2580_v17 = vld [vmem:[%s3284_s2 + $0x40] sm:$0xff]  }
  0x4d   :  { %1030 = vmatprep.mubr.bf16.mxu0 %v2466_v18  ;;  %1256 = vmatprep.mubr.bf16.mxu1 %v2466_v18  ;;  %v2556_v18 = vld [vmem:[%s3283_s0 + $0x8] ss:$16 sps:$4 sm:$0xff]  }
  0x4f   :  { %1098 = vmatpush1.bf16.msra.mxu0 %v2460_v19  ;;  %1324 = vmatpush1.bf16.msra.mxu1 %v2463_v20  ;;  %v2582_v19 = vld [vmem:[%s3284_s2 + $0xc0] sm:$0xff]   ;;  %v2559_v20 = vld [vmem:[%s3283_s0 + $0x2c] ss:$16 sps:$4 sm:$0xff]  }
  0x50   :  { %1099 = vmatprep.subr.bf16.mxu0 %v2471_v21  ;;  %1325 = vmatprep.subr.bf16.mxu1 %v2474_v22  ;;  %v2581_v21 = vld [vmem:[%s3284_s2] sm:$0xff]  }
  0x51   :  { %v2583_v22 = vld [vmem:[%s3284_s2 + $0x80] sm:$0xff]  }
  0x52   :  { %1031 = vmatmul.mubr.bf16.gmra.mrb[8].mxu0 %v2468_v23  ;;  %1257 = vmatmul.mubr.bf16.gmra.mrb[8].mxu1 %v2468_v23  ;;  %v2584_v23 = vld [vmem:[%s3284_s2 + $0x48] sm:$0xff]  }
  0x53   :  { %1100 = vmatpush1.bf16.msra.mxu0 %v2469_v24  ;;  %1326 = vmatpush1.bf16.msra.mxu1 %v2472_v25  ;;  %v2586_v24 = vld [vmem:[%s3284_s2 + $0xc8] sm:$0xff]  }
  0x54   :  { %1101 = vmatprep.subr.bf16.mxu0 %v2477_v26  ;;  %1327 = vmatprep.subr.bf16.mxu1 %v2480_v27  ;;  %v2585_v25 = vld [vmem:[%s3284_s2 + $0x8] sm:$0xff]  }
  0x55   :  { %1040 = vmatprep.mubr.bf16.mxu0 %v2481_v28  ;;  %1266 = vmatprep.mubr.bf16.mxu1 %v2481_v28  ;;  %v2587_v26 = vld [vmem:[%s3284_s2 + $0x88] sm:$0xff]   ;;  %v2588_v28 = vld [vmem:[%s3284_s2 + $0x50] sm:$0xff]  }
  0x56   :  { %v2561_v27 = vld [vmem:[%s3283_s0 + $0x28] ss:$16 sps:$4 sm:$0xff]  }
  0x57   :  { %1102 = vmatpush1.bf16.msra.mxu0 %v2475_v29  ;;  %1328 = vmatpush1.bf16.msra.mxu1 %v2478_v30  ;;  %v2562_v29 = vld [vmem:[%s3283_s0 + $0x4c] ss:$16 sps:$4 sm:$0xff]   ;;  %v2590_v30 = vld [vmem:[%s3284_s2 + $0xd0] sm:$0xff]  }
  0x58   :  { %1103 = vmatprep.subr.bf16.mxu0 %v2486_v31  ;;  %1329 = vmatprep.subr.bf16.mxu1 %v2489_v32  ;;  %v2589_v31 = vld [vmem:[%s3284_s2 + $0x10] sm:$0xff]  }
  0x59   :  { %v2591_v32 = vld [vmem:[%s3284_s2 + $0x90] sm:$0xff]  }
  0x5a   :  { %1041 = vmatmul.mubr.bf16.gmra.mrb[12].mxu0 %v2483_v33  ;;  %1267 = vmatmul.mubr.bf16.gmra.mrb[12].mxu1 %v2483_v33  ;;  %v2592_v33 = vld [vmem:[%s3284_s2 + $0x58] sm:$0xff]  }
  0x5b   :  { %1104 = vmatpush1.bf16.msra.mxu0 %v2484_v34  ;;  %1330 = vmatpush1.bf16.msra.mxu1 %v2487_v35  ;;  %v2594_v34 = vld [vmem:[%s3284_s2 + $0xd8] sm:$0xff]  }
  0x5c   :  { %1105 = vmatprep.subr.bf16.mxu0 %v2492_v36  ;;  %1331 = vmatprep.subr.bf16.mxu1 %v2495_v37  ;;  %v2593_v35 = vld [vmem:[%s3284_s2 + $0x18] sm:$0xff]   ;;  %v2596_v37 = vld [vmem:[%s3284_s2 + $0x60] sm:$0xff]  }
  0x5d   :  { %1050 = vmatprep.mubr.bf16.mxu0 %v2496_v38  ;;  %1276 = vmatprep.mubr.bf16.mxu1 %v2496_v38  ;;  %v2595_v36 = vld [vmem:[%s3284_s2 + $0x98] sm:$0xff]   ;;  %v2598_v38 = vld [vmem:[%s3284_s2 + $0xe0] sm:$0xff]  }
  0x5f   :  { %1106 = vmatpush1.bf16.msra.mxu0 %v2490_v39  ;;  %1332 = vmatpush1.bf16.msra.mxu1 %v2493_v40  ;;  %v2564_v39 = vld [vmem:[%s3283_s0 + $0x48] ss:$16 sps:$4 sm:$0xff]   ;;  %v2565_v40 = vld [vmem:[%s3283_s0 + $0x6c] ss:$16 sps:$4 sm:$0xff]  }
  0x60   :  { %1107 = vmatprep.subr.bf16.mxu0 %v2501_v41  ;;  %1333 = vmatprep.subr.bf16.mxu1 %v2504_v42  ;;  %v2597_v41 = vld [vmem:[%s3284_s2 + $0x20] sm:$0xff]  }
  0x61   :  { %v2599_v42 = vld [vmem:[%s3284_s2 + $0xa0] sm:$0xff]  }
  0x62   :  { %1051 = vmatmul.mubr.bf16.gmra.mrb[16].mxu0 %v2498_v43  ;;  %1277 = vmatmul.mubr.bf16.gmra.mrb[16].mxu1 %v2498_v43  ;;  %v2600_v43 = vld [vmem:[%s3284_s2 + $0x68] sm:$0xff]  }
  0x63   :  { %1108 = vmatpush1.bf16.msra.mxu0 %v2499_v44  ;;  %1334 = vmatpush1.bf16.msra.mxu1 %v2502_v45  ;;  %v2602_v44 = vld [vmem:[%s3284_s2 + $0xe8] sm:$0xff]  }
  0x64   :  { %1109 = vmatprep.subr.bf16.mxu0 %v2507_v46  ;;  %1335 = vmatprep.subr.bf16.mxu1 %v2510_v47  ;;  %v2601_v45 = vld [vmem:[%s3284_s2 + $0x28] sm:$0xff]   ;;  %v2604_v47 = vld [vmem:[%s3284_s2 + $0x70] sm:$0xff]  }
  0x65   :  { %1060 = vmatprep.mubr.bf16.mxu0 %v2511_v48  ;;  %1286 = vmatprep.mubr.bf16.mxu1 %v2511_v48  ;;  %v2603_v46 = vld [vmem:[%s3284_s2 + $0xa8] sm:$0xff]   ;;  %v2606_v48 = vld [vmem:[%s3284_s2 + $0xf0] sm:$0xff]  }
  0x67   :  { %1110 = vmatpush1.bf16.msra.mxu0 %v2505_v49  ;;  %1336 = vmatpush1.bf16.msra.mxu1 %v2508_v50  ;;  %v2567_v49 = vld [vmem:[%s3283_s0 + $0x68] ss:$16 sps:$4 sm:$0xff]   ;;  %v2568_v50 = vld [vmem:[%s3283_s0 + $0x8c] ss:$16 sps:$4 sm:$0xff]  }
  0x68   :  { %1111 = vmatprep.subr.bf16.mxu0 %v2516_v51  ;;  %1337 = vmatprep.subr.bf16.mxu1 %v2519_v52  ;;  %v2605_v51 = vld [vmem:[%s3284_s2 + $0x30] sm:$0xff]  }
  0x69   :  { %v2607_v52 = vld [vmem:[%s3284_s2 + $0xb0] sm:$0xff]  }
  0x6a   :  { %1061 = vmatmul.mubr.bf16.gmra.mrb[20].mxu0 %v2513_v53  ;;  %1287 = vmatmul.mubr.bf16.gmra.mrb[20].mxu1 %v2513_v53  ;;  %v2608_v53 = vld [vmem:[%s3284_s2 + $0x78] sm:$0xff]  }
  0x6b   :  { %1112 = vmatpush1.bf16.msra.mxu0 %v2514_v54  ;;  %1338 = vmatpush1.bf16.msra.mxu1 %v2517_v55  ;;  %v2570_v54 = vld [vmem:[%s3283_s0 + $0x88] ss:$16 sps:$4 sm:$0xff]   ;;  %v2571_v55 = vld [vmem:[%s3283_s0 + $0xac] ss:$16 sps:$4 sm:$0xff]  }
  0x6c   :  { %1113 = vmatprep.subr.bf16.mxu0 %v2522_v56  ;;  %1339 = vmatprep.subr.bf16.mxu1 %v2525_v57  ;;  %v2573_v56 = vld [vmem:[%s3283_s0 + $0xa8] ss:$16 sps:$4 sm:$0xff]   ;;  %v2574_v57 = vld [vmem:[%s3283_s0 + $0xcc] ss:$16 sps:$4 sm:$0xff]  }
  0x6d   :  { %1070 = vmatprep.mubr.bf16.mxu0 %v2526_v59  ;;  %1296 = vmatprep.mubr.bf16.mxu1 %v2526_v59  ;;  %v2577_v59 = vld [vmem:[%s3283_s0 + $0xec] ss:$16 sps:$4 sm:$0xff]  }
  0x6f   :  { %1114 = vmatpush1.bf16.msra.mxu0 %v2520_v58  ;;  %1340 = vmatpush1.bf16.msra.mxu1 %v2523_v60  ;;  %v2576_v58 = vld [vmem:[%s3283_s0 + $0xc8] ss:$16 sps:$4 sm:$0xff]  }
  0x70   :  { %1115 = vmatprep.subr.bf16.mxu0 %v2531_v61  ;;  %1341 = vmatprep.subr.bf16.mxu1 %v2534_v63  ;;  %v2579_v60 = vld [vmem:[%s3283_s0 + $0xe8] ss:$16 sps:$4 sm:$0xff]  }
  0x71   :  { %v2609_v61 = vld [vmem:[%s3284_s2 + $0x38] sm:$0xff]  }
  0x72   :  { %1071 = vmatmul.mubr.bf16.gmra.mrb[24].mxu0 %v2528_v62  ;;  %1297 = vmatmul.mubr.bf16.gmra.mrb[24].mxu1 %v2528_v62  ;;  %v2610_v62 = vld [vmem:[%s3284_s2 + $0xf8] sm:$0xff]  }
  0x73   :  { %1116 = vmatpush1.bf16.msra.mxu0 %v2529_v0  ;;  %1342 = vmatpush1.bf16.msra.mxu1 %v2532_v1  ;;  %v2611_v63 = vld [vmem:[%s3284_s2 + $0xb8] sm:$0xff]  }
  0x74   :  { %1117 = vmatprep.subr.bf16.mxu0 %v2537_v2  ;;  %1343 = vmatprep.subr.bf16.mxu1 %v2540_v3 }
  0x75   :  { %1080 = vmatprep.mubr.bf16.mxu0 %v2541_v5  ;;  %1306 = vmatprep.mubr.bf16.mxu1 %v2541_v5 }
  0x77   :  { %1118 = vmatpush1.bf16.msra.mxu0 %v2535_v4  ;;  %1344 = vmatpush1.bf16.msra.mxu1 %v2538_v6 }
  0x78   :  { %1119 = vmatprep.subr.bf16.mxu0 %v2546_v7  ;;  %1345 = vmatprep.subr.bf16.mxu1 %v2549_v9 }
  0x7a   :  { %1081 = vmatmul.mubr.bf16.gmra.mrb[28].mxu0 %v2543_v8  ;;  %1307 = vmatmul.mubr.bf16.gmra.mrb[28].mxu1 %v2543_v8 }
  0x7b   :  { %1120 = vmatpush1.bf16.msra.mxu0 %v2544_v10  ;;  %1346 = vmatpush1.bf16.msra.mxu1 %v2547_v11 }
  0x7c   :  { %1121 = vmatprep.subr.bf16.mxu0 %v2552_v12  ;;  %1347 = vmatprep.subr.bf16.mxu1 %v2555_v13 }
  0x7d   :  { %1123 = vmatprep.mubr.bf16.mxu0 %v2558_v15  ;;  %1349 = vmatprep.mubr.bf16.mxu1 %v2558_v15 }
  0x7f   :  { %1122 = vmatpush1.bf16.msra.mxu0 %v2550_v14  ;;  %1348 = vmatpush1.bf16.msra.mxu1 %v2553_v16 }
  0x80   :  { %2148 = vmatprep.subr.bf16.mxu0 %v2580_v17  ;;  %2212 = vmatprep.subr.bf16.mxu1 %v2582_v19 }
  0x82   :  { %1124 = vmatmul.mubr.bf16.vlgmr.msra.gmra.mrb[0].mxu0 %v2556_v18  ;;  %1350 = vmatmul.mubr.bf16.vlgmr.msra.gmra.mrb[0].mxu1 %v2556_v18 }
  0x83   :  { %1133 = vmatprep.mubr.bf16.mxu0 %v2559_v20  ;;  %1359 = vmatprep.mubr.bf16.mxu1 %v2559_v20 }
  0x84   :  { %2149 = vmatpush3.bf16.msra.mxu0 %v2581_v21  ;;  %2213 = vmatpush3.bf16.msra.mxu1 %v2583_v22 }
  0x85   :  { %2150 = vmatprep.subr.bf16.mxu0 %v2584_v23  ;;  %2214 = vmatprep.subr.bf16.mxu1 %v2586_v24 }
  0x88   :  { %2151 = vmatpush3.bf16.msra.mxu0 %v2585_v25  ;;  %2215 = vmatpush3.bf16.msra.mxu1 %v2587_v26 }
  0x89   :  { %2152 = vmatprep.subr.bf16.mxu0 %v2588_v28  ;;  %2216 = vmatprep.subr.bf16.mxu1 %v2590_v30 }
  0x8a   :  { %1134 = vmatmul.mubr.bf16.gmra.mrb[4].mxu0 %v2561_v27  ;;  %1360 = vmatmul.mubr.bf16.gmra.mrb[4].mxu1 %v2561_v27 }
  0x8b   :  { %1143 = vmatprep.mubr.bf16.mxu0 %v2562_v29  ;;  %1369 = vmatprep.mubr.bf16.mxu1 %v2562_v29 }
  0x8c   :  { %2153 = vmatpush3.bf16.msra.mxu0 %v2589_v31  ;;  %2217 = vmatpush3.bf16.msra.mxu1 %v2591_v32 }
  0x8d   :  { %2154 = vmatprep.subr.bf16.mxu0 %v2592_v33  ;;  %2218 = vmatprep.subr.bf16.mxu1 %v2594_v34 }
  0x90   :  { %2155 = vmatpush3.bf16.msra.mxu0 %v2593_v35  ;;  %2219 = vmatpush3.bf16.msra.mxu1 %v2595_v36 }
  0x91   :  { %2156 = vmatprep.subr.bf16.mxu0 %v2596_v37  ;;  %2220 = vmatprep.subr.bf16.mxu1 %v2598_v38 }
  0x92   :  { %1144 = vmatmul.mubr.bf16.gmra.mrb[8].mxu0 %v2564_v39  ;;  %1370 = vmatmul.mubr.bf16.gmra.mrb[8].mxu1 %v2564_v39 }
  0x93   :  { %1153 = vmatprep.mubr.bf16.mxu0 %v2565_v40  ;;  %1379 = vmatprep.mubr.bf16.mxu1 %v2565_v40 }
  0x94   :  { %2157 = vmatpush3.bf16.msra.mxu0 %v2597_v41  ;;  %2221 = vmatpush3.bf16.msra.mxu1 %v2599_v42 }
  0x95   :  { %2158 = vmatprep.subr.bf16.mxu0 %v2600_v43  ;;  %2222 = vmatprep.subr.bf16.mxu1 %v2602_v44 }
  0x98   :  { %2159 = vmatpush3.bf16.msra.mxu0 %v2601_v45  ;;  %2223 = vmatpush3.bf16.msra.mxu1 %v2603_v46 }
  0x99   :  { %2160 = vmatprep.subr.bf16.mxu0 %v2604_v47  ;;  %2224 = vmatprep.subr.bf16.mxu1 %v2606_v48 }
  0x9a   :  { %1154 = vmatmul.mubr.bf16.gmra.mrb[12].mxu0 %v2567_v49  ;;  %1380 = vmatmul.mubr.bf16.gmra.mrb[12].mxu1 %v2567_v49 }
  0x9b   :  { %1163 = vmatprep.mubr.bf16.mxu0 %v2568_v50  ;;  %1389 = vmatprep.mubr.bf16.mxu1 %v2568_v50 }
  0x9c   :  { %2161 = vmatpush3.bf16.msra.mxu0 %v2605_v51  ;;  %2225 = vmatpush3.bf16.msra.mxu1 %v2607_v52 }
  0x9d   :  { %2162 = vmatprep.subr.bf16.mxu0 %v2608_v53  ;;  %2226 = vmatprep.subr.bf16.mxu1 %v2610_v62 }
  0xa0   :  { %2163 = vmatpush3.bf16.msra.mxu0 %v2609_v61  ;;  %2227 = vmatpush3.bf16.msra.mxu1 %v2611_v63 }
  0xa2   :  { %1164 = vmatmul.mubr.bf16.gmra.mrb[16].mxu0 %v2570_v54  ;;  %1390 = vmatmul.mubr.bf16.gmra.mrb[16].mxu1 %v2570_v54 }
  0xa3   :  { %1173 = vmatprep.mubr.bf16.mxu0 %v2571_v55  ;;  %1399 = vmatprep.mubr.bf16.mxu1 %v2571_v55 }
  0xaa   :  { %1174 = vmatmul.mubr.bf16.gmra.mrb[20].mxu0 %v2573_v56  ;;  %1400 = vmatmul.mubr.bf16.gmra.mrb[20].mxu1 %v2573_v56 }
  0xab   :  { %1183 = vmatprep.mubr.bf16.mxu0 %v2574_v57  ;;  %1409 = vmatprep.mubr.bf16.mxu1 %v2574_v57 }
  0xb2   :  { %1184 = vmatmul.mubr.bf16.gmra.mrb[24].mxu0 %v2576_v58  ;;  %1410 = vmatmul.mubr.bf16.gmra.mrb[24].mxu1 %v2576_v58 }
  0xb3   :  { %1193 = vmatprep.mubr.bf16.mxu0 %v2577_v59  ;;  %1419 = vmatprep.mubr.bf16.mxu1 %v2577_v59 }
  0xba   :  { %1194 = vmatmul.mubr.bf16.gmra.mrb[28].mxu0 %v2579_v60  ;;  %1420 = vmatmul.mubr.bf16.gmra.mrb[28].mxu1 %v2579_v60 }
 0x155   :  { %v1125_v0 = vpop.f32.mrb[0].mxu0  ;;  %v1351_v1 = vpop.f32.mrb[0].mxu1 }
 0x156   :  { %v1127_v2 = vpop.f32.mrb[1].mxu0  ;;  %v1353_v3 = vpop.f32.mrb[1].mxu1 }
 0x157   :  { %v1129_v4 = vpop.f32.mrb[2].mxu0  ;;  %v1355_v5 = vpop.f32.mrb[2].mxu1 }
 0x158   :  { %v1430_v6 = vpack.c.bf16 %v1129_v4, %v1125_v0  ;;  %v1432_v7 = vpack.c.bf16 %v1355_v5, %v1351_v1  ;;  %v1131_v8 = vpop.f32.mrb[3].mxu0  ;;  %v1357_v9 = vpop.f32.mrb[3].mxu1 }
 0x159   :  { %v1431_v10 = vpack.c.bf16 %v1131_v8, %v1127_v2  ;;  %v1433_v11 = vpack.c.bf16 %v1357_v9, %v1353_v3 }
 0x15b   :  { %1757 = vmatprep.mubr.bf16.mxu0 %v1431_v10  ;;  %1854 = vmatprep.mubr.bf16.mxu1 %v1433_v11 }
 0x15c   :  { %1758 = vmatmul.mubr.bf16.vlgmr.msra.gmra.mrb[32].mxu0 %v1430_v6  ;;  %1855 = vmatmul.mubr.bf16.vlgmr.msra.gmra.mrb[32].mxu1 %v1432_v7 }
 0x15d   :  { %v1135_v12 = vpop.f32.mrb[4].mxu0  ;;  %v1361_v13 = vpop.f32.mrb[4].mxu1 }
 0x15e   :  { %v1137_v14 = vpop.f32.mrb[5].mxu0  ;;  %v1363_v15 = vpop.f32.mrb[5].mxu1 }
 0x15f   :  { %v1139_v16 = vpop.f32.mrb[6].mxu0  ;;  %v1365_v17 = vpop.f32.mrb[6].mxu1 }
 0x160   :  { %v1434_v18 = vpack.c.bf16 %v1139_v16, %v1135_v12  ;;  %v1436_v19 = vpack.c.bf16 %v1365_v17, %v1361_v13  ;;  %v1141_v20 = vpop.f32.mrb[7].mxu0  ;;  %v1367_v21 = vpop.f32.mrb[7].mxu1 }
 0x161   :  { %v1435_v22 = vpack.c.bf16 %v1141_v20, %v1137_v14  ;;  %v1437_v23 = vpack.c.bf16 %v1367_v21, %v1363_v15 }
 0x163   :  { %1765 = vmatprep.mubr.bf16.mxu0 %v1435_v22  ;;  %1862 = vmatprep.mubr.bf16.mxu1 %v1437_v23 }
 0x164   :  { %1766 = vmatmul.mubr.bf16.gmra.mrb[36].mxu0 %v1434_v18  ;;  %1863 = vmatmul.mubr.bf16.gmra.mrb[36].mxu1 %v1436_v19 }
 0x165   :  { %v1145_v24 = vpop.f32.mrb[8].mxu0  ;;  %v1371_v25 = vpop.f32.mrb[8].mxu1 }
 0x166   :  { %v1147_v26 = vpop.f32.mrb[9].mxu0  ;;  %v1373_v27 = vpop.f32.mrb[9].mxu1 }
 0x167   :  { %v1149_v28 = vpop.f32.mrb[10].mxu0  ;;  %v1375_v29 = vpop.f32.mrb[10].mxu1 }
 0x168   :  { %v1438_v30 = vpack.c.bf16 %v1149_v28, %v1145_v24  ;;  %v1440_v31 = vpack.c.bf16 %v1375_v29, %v1371_v25  ;;  %v1151_v32 = vpop.f32.mrb[11].mxu0  ;;  %v1377_v33 = vpop.f32.mrb[11].mxu1 }
 0x169   :  { %v1439_v34 = vpack.c.bf16 %v1151_v32, %v1147_v26  ;;  %v1441_v35 = vpack.c.bf16 %v1377_v33, %v1373_v27 }
 0x16b   :  { %1773 = vmatprep.mubr.bf16.mxu0 %v1439_v34  ;;  %1870 = vmatprep.mubr.bf16.mxu1 %v1441_v35  ;;  %v3216_v34 = vld [vmem:[%s3285_s3] ss:$0 sm:$0xff] }
 0x16c   :  { %1774 = vmatmul.mubr.bf16.gmra.mrb[40].mxu0 %v1438_v30  ;;  %1871 = vmatmul.mubr.bf16.gmra.mrb[40].mxu1 %v1440_v31 }
 0x16d   :  { %v1155_v36 = vpop.f32.mrb[12].mxu0  ;;  %v1381_v37 = vpop.f32.mrb[12].mxu1 }
 0x16e   :  { %v1157_v38 = vpop.f32.mrb[13].mxu0  ;;  %v1383_v39 = vpop.f32.mrb[13].mxu1 }
 0x16f   :  { %v1159_v40 = vpop.f32.mrb[14].mxu0  ;;  %v1385_v41 = vpop.f32.mrb[14].mxu1 }
 0x170   :  { %v1442_v42 = vpack.c.bf16 %v1159_v40, %v1155_v36  ;;  %v1444_v43 = vpack.c.bf16 %v1385_v41, %v1381_v37  ;;  %v1161_v44 = vpop.f32.mrb[15].mxu0  ;;  %v1387_v45 = vpop.f32.mrb[15].mxu1 }
 0x171   :  { %v1443_v46 = vpack.c.bf16 %v1161_v44, %v1157_v38  ;;  %v1445_v47 = vpack.c.bf16 %v1387_v45, %v1383_v39 }
 0x173   :  { %1781 = vmatprep.mubr.bf16.mxu0 %v1443_v46  ;;  %1878 = vmatprep.mubr.bf16.mxu1 %v1445_v47 }
 0x174   :  { %1782 = vmatmul.mubr.bf16.gmra.mrb[44].mxu0 %v1442_v42  ;;  %1879 = vmatmul.mubr.bf16.gmra.mrb[44].mxu1 %v1444_v43 }
 0x175   :  { %v1165_v48 = vpop.f32.mrb[16].mxu0  ;;  %v1391_v49 = vpop.f32.mrb[16].mxu1 }
 0x176   :  { %v1167_v50 = vpop.f32.mrb[17].mxu0  ;;  %v1393_v51 = vpop.f32.mrb[17].mxu1 }
 0x177   :  { %v1169_v52 = vpop.f32.mrb[18].mxu0  ;;  %v1395_v53 = vpop.f32.mrb[18].mxu1 }
 0x178   :  { %v1446_v54 = vpack.c.bf16 %v1169_v52, %v1165_v48  ;;  %v1448_v55 = vpack.c.bf16 %v1395_v53, %v1391_v49  ;;  %v1171_v56 = vpop.f32.mrb[19].mxu0  ;;  %v1397_v57 = vpop.f32.mrb[19].mxu1 }
 0x179   :  { %v1447_v58 = vpack.c.bf16 %v1171_v56, %v1167_v50  ;;  %v1449_v59 = vpack.c.bf16 %v1397_v57, %v1393_v51 }
 0x17b   :  { %1789 = vmatprep.mubr.bf16.mxu0 %v1447_v58  ;;  %1886 = vmatprep.mubr.bf16.mxu1 %v1449_v59 }
 0x17c   :  { %1790 = vmatmul.mubr.bf16.gmra.mrb[48].mxu0 %v1446_v54  ;;  %1887 = vmatmul.mubr.bf16.gmra.mrb[48].mxu1 %v1448_v55 }
 0x17d   :  { %v1175_v60 = vpop.f32.mrb[20].mxu0  ;;  %v1401_v61 = vpop.f32.mrb[20].mxu1 }
 0x17e   :  { %v1177_v62 = vpop.f32.mrb[21].mxu0  ;;  %v1403_v63 = vpop.f32.mrb[21].mxu1 }
 0x17f   :  { %v1179_v0 = vpop.f32.mrb[22].mxu0  ;;  %v1405_v1 = vpop.f32.mrb[22].mxu1 }
 0x180   :  { %v1450_v2 = vpack.c.bf16 %v1179_v0, %v1175_v60  ;;  %v1452_v3 = vpack.c.bf16 %v1405_v1, %v1401_v61  ;;  %v1181_v4 = vpop.f32.mrb[23].mxu0  ;;  %v1407_v5 = vpop.f32.mrb[23].mxu1 }
 0x181   :  { %v1451_v6 = vpack.c.bf16 %v1181_v4, %v1177_v62  ;;  %v1453_v7 = vpack.c.bf16 %v1407_v5, %v1403_v63 }
 0x183   :  { %1797 = vmatprep.mubr.bf16.mxu0 %v1451_v6  ;;  %1894 = vmatprep.mubr.bf16.mxu1 %v1453_v7 }
 0x184   :  { %1798 = vmatmul.mubr.bf16.gmra.mrb[52].mxu0 %v1450_v2  ;;  %1895 = vmatmul.mubr.bf16.gmra.mrb[52].mxu1 %v1452_v3 }
 0x185   :  { %v1185_v8 = vpop.f32.mrb[24].mxu0  ;;  %v1411_v9 = vpop.f32.mrb[24].mxu1 }
 0x186   :  { %v1187_v10 = vpop.f32.mrb[25].mxu0  ;;  %v1413_v11 = vpop.f32.mrb[25].mxu1 }
 0x187   :  { %v1189_v12 = vpop.f32.mrb[26].mxu0  ;;  %v1415_v13 = vpop.f32.mrb[26].mxu1 }
 0x188   :  { %v1454_v14 = vpack.c.bf16 %v1189_v12, %v1185_v8  ;;  %v1456_v15 = vpack.c.bf16 %v1415_v13, %v1411_v9  ;;  %v1191_v16 = vpop.f32.mrb[27].mxu0  ;;  %v1417_v17 = vpop.f32.mrb[27].mxu1 }
 0x189   :  { %v1455_v18 = vpack.c.bf16 %v1191_v16, %v1187_v10  ;;  %v1457_v19 = vpack.c.bf16 %v1417_v17, %v1413_v11 }
 0x18b   :  { %1805 = vmatprep.mubr.bf16.mxu0 %v1455_v18  ;;  %1902 = vmatprep.mubr.bf16.mxu1 %v1457_v19 }
 0x18c   :  { %1806 = vmatmul.mubr.bf16.gmra.mrb[56].mxu0 %v1454_v14  ;;  %1903 = vmatmul.mubr.bf16.gmra.mrb[56].mxu1 %v1456_v15 }
 0x18d   :  { %v1195_v20 = vpop.f32.mrb[28].mxu0  ;;  %v1421_v21 = vpop.f32.mrb[28].mxu1 }
 0x18e   :  { %v1197_v22 = vpop.f32.mrb[29].mxu0  ;;  %v1423_v23 = vpop.f32.mrb[29].mxu1 }
 0x18f   :  { %v1199_v24 = vpop.f32.mrb[30].mxu0  ;;  %v1425_v25 = vpop.f32.mrb[30].mxu1 }
 0x190   :  { %v1458_v26 = vpack.c.bf16 %v1199_v24, %v1195_v20  ;;  %v1460_v27 = vpack.c.bf16 %v1425_v25, %v1421_v21  ;;  %v1201_v28 = vpop.f32.mrb[31].mxu0  ;;  %v1427_v29 = vpop.f32.mrb[31].mxu1 }
 0x191   :  { %v1459_v30 = vpack.c.bf16 %v1201_v28, %v1197_v22  ;;  %v1461_v31 = vpack.c.bf16 %v1427_v29, %v1423_v23 }
 0x193   :  { %1813 = vmatprep.mubr.bf16.mxu0 %v1459_v30  ;;  %1910 = vmatprep.mubr.bf16.mxu1 %v1461_v31 }
 0x194   :  { %1814 = vmatmul.mubr.bf16.gmra.mrb[60].mxu0 %v1458_v26  ;;  %1911 = vmatmul.mubr.bf16.gmra.mrb[60].mxu1 %v1460_v27 }
 0x22f   :  { %v2164_v32 = vpop.f32.mrb[32].mxu0  ;;  %v2228_v33 = vpop.f32.mrb[32].mxu1 }
 0x230   :  { %v2165_v35 = vpop.f32.mrb[33].mxu0  ;;  %v2229_v36 = vpop.f32.mrb[33].mxu1 }
 0x231   :  { %v2166_v37 = vadd.f32 %v2165_v35, %v2164_v32  ;;  %v2230_v38 = vadd.f32 %v2229_v36, %v2228_v33  ;;  %v2167_v39 = vpop.f32.mrb[34].mxu0  ;;  %v2231_v40 = vpop.f32.mrb[34].mxu1 }
 0x232   :  { %v2168_v41 = vpop.f32.mrb[35].mxu0  ;;  %v2232_v42 = vpop.f32.mrb[35].mxu1 }
 0x233   :  { %v1760_v43 = vadd.f32 %v2166_v37, %v3216_v34  ;;  %v2169_v44 = vadd.f32 %v2168_v41, %v2167_v39  ;;  %v2233_v45 = vadd.f32 %v2232_v42, %v2231_v40 }
 0x235   :  { %v1857_v46 = vadd.f32 %v2230_v38, %v1760_v43  ;;  %v1763_v47 = vadd.f32 %v2169_v44, %v3216_v34 }
 0x237   :  { %v1919_v48 = vmax.f32 %v1857_v46, 0.0  ;;  %v1860_v49 = vadd.f32 %v2233_v45, %v1763_v47  ;;  %v2170_v50 = vpop.f32.mrb[36].mxu0  ;;  %v2234_v51 = vpop.f32.mrb[36].mxu1 }
 0x238   :  { %v2171_v52 = vpop.f32.mrb[37].mxu0  ;;  %v2235_v53 = vpop.f32.mrb[37].mxu1 }
 0x239   :  { %1935 = vst [vmem:[%s3286_s4] sm:$0xff] %v1919_v48  ;;  %v1920_v54 = vmax.f32 %v1860_v49, 0.0  ;;  %v2172_v55 = vadd.f32 %v2171_v52, %v2170_v50  ;;  %v2236_v56 = vadd.f32 %v2235_v53, %v2234_v51  ;;  %v2173_v57 = vpop.f32.mrb[38].mxu0  ;;  %v2237_v58 = vpop.f32.mrb[38].mxu1 }
 0x23a   :  { %v2174_v59 = vpop.f32.mrb[39].mxu0  ;;  %v2238_v60 = vpop.f32.mrb[39].mxu1 }
 0x23b   :  { %1936 = vst [vmem:[%s3286_s4 + $0x8] sm:$0xff] %v1920_v54  ;;  %v1768_v61 = vadd.f32 %v2172_v55, %v3216_v34  ;;  %v2175_v62 = vadd.f32 %v2174_v59, %v2173_v57  ;;  %v2239_v63 = vadd.f32 %v2238_v60, %v2237_v58 }
 0x23d   :  { %v1865_v0 = vadd.f32 %v2236_v56, %v1768_v61  ;;  %v1771_v1 = vadd.f32 %v2175_v62, %v3216_v34 }
 0x23f   :  { %v1921_v2 = vmax.f32 %v1865_v0, 0.0  ;;  %v1868_v3 = vadd.f32 %v2239_v63, %v1771_v1  ;;  %v2176_v4 = vpop.f32.mrb[40].mxu0  ;;  %v2240_v5 = vpop.f32.mrb[40].mxu1 }
 0x240   :  { %v2177_v6 = vpop.f32.mrb[41].mxu0  ;;  %v2241_v7 = vpop.f32.mrb[41].mxu1 }
 0x241   :  { %1937 = vst [vmem:[%s3286_s4 + $0x10] sm:$0xff] %v1921_v2  ;;  %v1922_v8 = vmax.f32 %v1868_v3, 0.0  ;;  %v2178_v9 = vadd.f32 %v2177_v6, %v2176_v4  ;;  %v2242_v10 = vadd.f32 %v2241_v7, %v2240_v5  ;;  %v2179_v11 = vpop.f32.mrb[42].mxu0  ;;  %v2243_v12 = vpop.f32.mrb[42].mxu1 }
 0x242   :  { %v2180_v13 = vpop.f32.mrb[43].mxu0  ;;  %v2244_v14 = vpop.f32.mrb[43].mxu1 }
 0x243   :  { %1938 = vst [vmem:[%s3286_s4 + $0x18] sm:$0xff] %v1922_v8  ;;  %v1776_v15 = vadd.f32 %v2178_v9, %v3216_v34  ;;  %v2181_v16 = vadd.f32 %v2180_v13, %v2179_v11  ;;  %v2245_v17 = vadd.f32 %v2244_v14, %v2243_v12 }
 0x245   :  { %v1873_v18 = vadd.f32 %v2242_v10, %v1776_v15  ;;  %v1779_v19 = vadd.f32 %v2181_v16, %v3216_v34 }
 0x247   :  { %v1923_v20 = vmax.f32 %v1873_v18, 0.0  ;;  %v1876_v21 = vadd.f32 %v2245_v17, %v1779_v19  ;;  %v2182_v22 = vpop.f32.mrb[44].mxu0  ;;  %v2246_v23 = vpop.f32.mrb[44].mxu1 }
 0x248   :  { %v2183_v24 = vpop.f32.mrb[45].mxu0  ;;  %v2247_v25 = vpop.f32.mrb[45].mxu1 }
 0x249   :  { %1939 = vst [vmem:[%s3286_s4 + $0x20] sm:$0xff] %v1923_v20  ;;  %v1924_v26 = vmax.f32 %v1876_v21, 0.0  ;;  %v2184_v27 = vadd.f32 %v2183_v24, %v2182_v22  ;;  %v2248_v28 = vadd.f32 %v2247_v25, %v2246_v23  ;;  %v2185_v29 = vpop.f32.mrb[46].mxu0  ;;  %v2249_v30 = vpop.f32.mrb[46].mxu1 }
 0x24a   :  { %v2186_v31 = vpop.f32.mrb[47].mxu0  ;;  %v2250_v32 = vpop.f32.mrb[47].mxu1 }
 0x24b   :  { %1940 = vst [vmem:[%s3286_s4 + $0x28] sm:$0xff] %v1924_v26  ;;  %v1784_v33 = vadd.f32 %v2184_v27, %v3216_v34  ;;  %v2187_v35 = vadd.f32 %v2186_v31, %v2185_v29  ;;  %v2251_v36 = vadd.f32 %v2250_v32, %v2249_v30 }
 0x24d   :  { %v1881_v37 = vadd.f32 %v2248_v28, %v1784_v33  ;;  %v1787_v38 = vadd.f32 %v2187_v35, %v3216_v34 }
 0x24f   :  { %v1925_v39 = vmax.f32 %v1881_v37, 0.0  ;;  %v1884_v40 = vadd.f32 %v2251_v36, %v1787_v38  ;;  %v2188_v41 = vpop.f32.mrb[48].mxu0  ;;  %v2252_v42 = vpop.f32.mrb[48].mxu1 }
 0x250   :  { %v2189_v43 = vpop.f32.mrb[49].mxu0  ;;  %v2253_v44 = vpop.f32.mrb[49].mxu1 }
 0x251   :  { %1941 = vst [vmem:[%s3286_s4 + $0x30] sm:$0xff] %v1925_v39  ;;  %v1926_v45 = vmax.f32 %v1884_v40, 0.0  ;;  %v2190_v46 = vadd.f32 %v2189_v43, %v2188_v41  ;;  %v2254_v47 = vadd.f32 %v2253_v44, %v2252_v42  ;;  %v2191_v48 = vpop.f32.mrb[50].mxu0  ;;  %v2255_v49 = vpop.f32.mrb[50].mxu1 }
 0x252   :  { %v2192_v50 = vpop.f32.mrb[51].mxu0  ;;  %v2256_v51 = vpop.f32.mrb[51].mxu1 }
 0x253   :  { %1942 = vst [vmem:[%s3286_s4 + $0x38] sm:$0xff] %v1926_v45  ;;  %v1792_v52 = vadd.f32 %v2190_v46, %v3216_v34  ;;  %v2193_v53 = vadd.f32 %v2192_v50, %v2191_v48  ;;  %v2257_v54 = vadd.f32 %v2256_v51, %v2255_v49 }
 0x255   :  { %v1889_v55 = vadd.f32 %v2254_v47, %v1792_v52  ;;  %v1795_v56 = vadd.f32 %v2193_v53, %v3216_v34 }
 0x257   :  { %v1927_v57 = vmax.f32 %v1889_v55, 0.0  ;;  %v1892_v58 = vadd.f32 %v2257_v54, %v1795_v56  ;;  %v2194_v59 = vpop.f32.mrb[52].mxu0  ;;  %v2258_v60 = vpop.f32.mrb[52].mxu1 }
 0x258   :  { %v2195_v61 = vpop.f32.mrb[53].mxu0  ;;  %v2259_v62 = vpop.f32.mrb[53].mxu1 }
 0x259   :  { %1943 = vst [vmem:[%s3286_s4 + $0x40] sm:$0xff] %v1927_v57  ;;  %v1928_v63 = vmax.f32 %v1892_v58, 0.0  ;;  %v2196_v0 = vadd.f32 %v2195_v61, %v2194_v59  ;;  %v2260_v1 = vadd.f32 %v2259_v62, %v2258_v60  ;;  %v2197_v2 = vpop.f32.mrb[54].mxu0  ;;  %v2261_v3 = vpop.f32.mrb[54].mxu1 }
 0x25a   :  { %v2198_v4 = vpop.f32.mrb[55].mxu0  ;;  %v2262_v5 = vpop.f32.mrb[55].mxu1 }
 0x25b   :  { %1944 = vst [vmem:[%s3286_s4 + $0x48] sm:$0xff] %v1928_v63  ;;  %v1800_v6 = vadd.f32 %v2196_v0, %v3216_v34  ;;  %v2199_v7 = vadd.f32 %v2198_v4, %v2197_v2  ;;  %v2263_v8 = vadd.f32 %v2262_v5, %v2261_v3 }
 0x25d   :  { %v1897_v9 = vadd.f32 %v2260_v1, %v1800_v6  ;;  %v1803_v10 = vadd.f32 %v2199_v7, %v3216_v34 }
 0x25f   :  { %v1929_v11 = vmax.f32 %v1897_v9, 0.0  ;;  %v1900_v12 = vadd.f32 %v2263_v8, %v1803_v10  ;;  %v2200_v13 = vpop.f32.mrb[56].mxu0  ;;  %v2264_v14 = vpop.f32.mrb[56].mxu1 }
 0x260   :  { %v2201_v15 = vpop.f32.mrb[57].mxu0  ;;  %v2265_v16 = vpop.f32.mrb[57].mxu1 }
 0x261   :  { %1945 = vst [vmem:[%s3286_s4 + $0x50] sm:$0xff] %v1929_v11  ;;  %v1930_v17 = vmax.f32 %v1900_v12, 0.0  ;;  %v2202_v18 = vadd.f32 %v2201_v15, %v2200_v13  ;;  %v2266_v19 = vadd.f32 %v2265_v16, %v2264_v14  ;;  %v2203_v20 = vpop.f32.mrb[58].mxu0  ;;  %v2267_v21 = vpop.f32.mrb[58].mxu1 }
 0x262   :  { %v2204_v22 = vpop.f32.mrb[59].mxu0  ;;  %v2268_v23 = vpop.f32.mrb[59].mxu1 }
 0x263   :  { %1946 = vst [vmem:[%s3286_s4 + $0x58] sm:$0xff] %v1930_v17  ;;  %v1808_v24 = vadd.f32 %v2202_v18, %v3216_v34  ;;  %v2205_v25 = vadd.f32 %v2204_v22, %v2203_v20  ;;  %v2269_v26 = vadd.f32 %v2268_v23, %v2267_v21 }
 0x265   :  { %v1905_v27 = vadd.f32 %v2266_v19, %v1808_v24  ;;  %v1811_v28 = vadd.f32 %v2205_v25, %v3216_v34 }
 0x267   :  { %v1931_v29 = vmax.f32 %v1905_v27, 0.0  ;;  %v1908_v30 = vadd.f32 %v2269_v26, %v1811_v28  ;;  %v2206_v31 = vpop.f32.mrb[60].mxu0  ;;  %v2270_v32 = vpop.f32.mrb[60].mxu1 }
 0x268   :  { %v2207_v33 = vpop.f32.mrb[61].mxu0  ;;  %v2271_v35 = vpop.f32.mrb[61].mxu1 }
 0x269   :  { %1947 = vst [vmem:[%s3286_s4 + $0x60] sm:$0xff] %v1931_v29  ;;  %v1932_v36 = vmax.f32 %v1908_v30, 0.0  ;;  %v2208_v37 = vadd.f32 %v2207_v33, %v2206_v31  ;;  %v2272_v38 = vadd.f32 %v2271_v35, %v2270_v32  ;;  %v2209_v39 = vpop.f32.mrb[62].mxu0  ;;  %v2273_v40 = vpop.f32.mrb[62].mxu1 }
 0x26a   :  { %v2210_v41 = vpop.f32.mrb[63].mxu0  ;;  %v2274_v42 = vpop.f32.mrb[63].mxu1 }
 0x26b   :  { %1948 = vst [vmem:[%s3286_s4 + $0x68] sm:$0xff] %v1932_v36  ;;  %v1816_v43 = vadd.f32 %v2208_v37, %v3216_v34  ;;  %v2211_v44 = vadd.f32 %v2210_v41, %v2209_v39  ;;  %v2275_v45 = vadd.f32 %v2274_v42, %v2273_v40 }
 0x26d   :  { %v1913_v46 = vadd.f32 %v2272_v38, %v1816_v43  ;;  %v1819_v47 = vadd.f32 %v2211_v44, %v3216_v34 }
 0x26f   :  { %v1933_v48 = vmax.f32 %v1913_v46, 0.0  ;;  %v1916_v49 = vadd.f32 %v2275_v45, %v1819_v47 }
 0x271   :  { %1949 = vst [vmem:[%s3286_s4 + $0x70] sm:$0xff] %v1933_v48  ;;  %v1934_v50 = vmax.f32 %v1916_v49, 0.0 }
 0x273   :  { %1950 = vst [vmem:[%s3286_s4 + $0x78] sm:$0xff] %v1934_v50 }

</bundles_post_ra>
